<compile_context>
chip_gen: v6e
topology: v6e:2x2x1
jax: 0.10.0
libtpu: 0.0.40
codegen_flags: <defaults>
</compile_context>

<pallas_src>
import math

import jax
import jax.numpy as jnp
from jax import lax
from jax.experimental import pallas as pl
from jax.experimental.pallas import tpu as pltpu


_BIG_DIST = 1e9                    # sentinel for pairs touching a non-selected pixel
_VMEM_LIMIT = 32 * 1024 * 1024     # safe on v5e/v6e (128 MiB) and v7x (64 MiB)


# ----------------------------------------------------------------------------
# LBP helpers (skimage.feature.local_binary_pattern, method='uniform')
# ----------------------------------------------------------------------------
def _neighbor_offsets(n_points, radius):
    # identical to skimage's sampling grid (rounded to 5 decimals)
    offs = []
    for i in range(n_points):
        rr = round(-radius * math.sin(2.0 * math.pi * i / n_points), 5)
        cc = round(radius * math.cos(2.0 * math.pi * i / n_points), 5)
        offs.append((rr, cc))
    return offs


def _neighbor_terms(offsets):
    """Per neighbor: list of ((dr, dc) integer shift, bilinear weight)."""
    per_neighbor = []
    for rr, cc in offsets:
        minr, maxr = int(math.floor(rr)), int(math.ceil(rr))
        minc, maxc = int(math.floor(cc)), int(math.ceil(cc))
        fr, fc = float(rr - minr), float(cc - minc)
        r_terms = [(minr, 1.0)] if fr == 0.0 else [(minr, 1.0 - fr), (maxr, fr)]
        c_terms = [(minc, 1.0)] if fc == 0.0 else [(minc, 1.0 - fc), (maxc, fc)]
        per_neighbor.append([((r, c), wr * wc)
                             for r, wr in r_terms for c, wc in c_terms])
    return per_neighbor


def _image_mean(x):
    # chained single-axis reductions (lane reduce then sublane reduce)
    s = jnp.sum(x, axis=2, keepdims=True)
    s = jnp.sum(s, axis=1, keepdims=True)
    return s * (1.0 / (x.shape[1] * x.shape[2]))


# ----------------------------------------------------------------------------
# Kernel 1: per-image sigmoid + mean-threshold + uniform LBP + point-mask
# Block = (Bt, H, W): several images per grid step (amortizes ~0.35us/step).
# ----------------------------------------------------------------------------
def _make_lbp_kernel(n_points, radius, point_threshold, H, W):
    offsets = _neighbor_offsets(n_points, radius)
    terms = _neighbor_terms(offsets)
    unique_shifts = sorted({sh for neigh in terms for (sh, _) in neigh})
    unique_drs = sorted({dr for (dr, _) in unique_shifts})
    npts = n_points
    thr = float(point_threshold)

    def kernel(pred_ref, lab_ref, p_pts_ref, m_pts_ref):
        # Hoisted iota planes + per-offset boundary masks; computed once and
        # shared by both branches and every image in the block (JAX does not
        # CSE broadcast_in_dim, so do it explicitly).
        rows = lax.broadcasted_iota(jnp.int32, (1, H, W), 1)
        cols = lax.broadcasted_iota(jnp.int32, (1, H, W), 2)
        valid = {
            (dr, dc): ((rows + dr >= 0) & (rows + dr < H)
                       & (cols + dc >= 0) & (cols + dc < W))
            for (dr, dc) in unique_shifts if (dr, dc) != (0, 0)
        }

        def shifted_cache(x_bin):
            # De-duplicated shifts: one roll per unique row offset, then one
            # roll per unique (dr, dc) with dc != 0 (XLU work ~2x lower than
            # issuing the rolls per neighbor).
            row_rolled = {dr: (x_bin if dr == 0 else jnp.roll(x_bin, -dr, axis=1))
                          for dr in unique_drs}
            cache = {}
            for (dr, dc) in unique_shifts:
                s = row_rolled[dr]
                if dc != 0:
                    s = jnp.roll(s, -dc, axis=2)
                if (dr, dc) != (0, 0):           # identity shift is never OOB
                    s = jnp.where(valid[(dr, dc)], s, jnp.float32(0.0))
                cache[(dr, dc)] = s
            return cache

        def point_mask(x_bin):
            """'uniform' LBP (skimage semantics) then (lbp < threshold) mask."""
            cache = shifted_cache(x_bin)
            center = x_bin - jnp.float32(1e-5)
            signed = []
            for neigh in terms:
                samp = None
                for (sh, w) in neigh:
                    term = cache[sh] if w == 1.0 else jnp.float32(w) * cache[sh]
                    samp = term if samp is None else samp + term
                # tiny eps absorbs f32 rounding of the bilinear weights; the
                # binary image guarantees true gaps >= ~0.086, so the eps
                # cannot flip a decision.
                signed.append((samp >= center).astype(jnp.float32))
            changes = jnp.zeros_like(x_bin)
            for i in range(npts - 1):            # non-circular, as in skimage
                changes = changes + jnp.abs(signed[i] - signed[i + 1])
            n_ones = signed[0]
            for i in range(1, npts):
                n_ones = n_ones + signed[i]
            lbp = jnp.where(changes <= 2.0, n_ones, jnp.float32(npts + 1))
            return (lbp < thr).astype(jnp.float32)

        # prediction branch: sigmoid -> binarize at per-image mean -> LBP mask
        logits = pred_ref[...].astype(jnp.float32)
        prob = jax.nn.sigmoid(logits)
        p_bin = (prob > _image_mean(prob)).astype(jnp.float32)
        p_pts_ref[...] = point_mask(p_bin)

        # label branch: binarize at per-image mean -> LBP mask
        m = lab_ref[...].astype(jnp.float32)
        m_bin = (m > _image_mean(m)).astype(jnp.float32)
        m_pts_ref[...] = point_mask(m_bin)

    return kernel


def _pick_batch_tile(B, H, W, max_bt=8, vmem_budget=16 * 1024 * 1024,
                     live_arrays=24):
    """Largest divisor of B that keeps ~live_arrays f32 images inside VMEM."""
    per_image = max(H * W * 4 * live_arrays, 1)
    cap = max(1, min(max_bt, vmem_budget // per_image))
    bt = min(B, cap)
    while B % bt != 0:
        bt -= 1
    return bt


def lbp_point_masks(pred, lab, *, n_points, radius, point_threshold):
    B, H, W = pred.shape
    bt = _pick_batch_tile(B, H, W)
    kernel = _make_lbp_kernel(n_points, radius, point_threshold, H, W)
    blk = pl.BlockSpec((bt, H, W), lambda b: (b, 0, 0))
    # TODO(synk): for W < 128 the (H, W) layout leaves most lanes idle; a
    # lane-packed (H, Bt*W) layout needs segmented per-image means/masks and
    # is not implemented here.
    return pl.pallas_call(
        kernel,
        grid=(B // bt,),
        in_specs=[blk, blk],
        out_specs=(blk, blk),
        out_shape=(jax.ShapeDtypeStruct((B, H, W), jnp.float32),
                   jax.ShapeDtypeStruct((B, H, W), jnp.float32)),
        compiler_params=pltpu.CompilerParams(
            dimension_semantics=("parallel",),
            vmem_limit_bytes=_VMEM_LIMIT),
    )(pred, lab)


# ----------------------------------------------------------------------------
# Kernel 2: masked all-pairs Euclidean distance over pixel coordinates,
# tiled over the (N, N) output.  One distance tile is computed per grid step
# and masked twice (prediction & label point masks).
# ----------------------------------------------------------------------------
def _pdist_kernel(cq_ref, cp_ref, pm_row_ref, pm_col_ref, mm_row_ref,
                  mm_col_ref, dp_ref, dm_ref):
    qr = cq_ref[0:1, :]                      # (1, TN)  lane-axis row coords
    qc = cq_ref[1:2, :]                      # (1, TN)  lane-axis col coords
    pr = cp_ref[:, 0:1]                      # (TM, 1)  sublane-axis row coords
    pc = cp_ref[:, 1:2]                      # (TM, 1)  sublane-axis col coords
    dr = pr - qr                             # (TM, TN)
    dc = pc - qc
    d = jnp.sqrt(dr * dr + dc * dc)          # shared between both outputs
    big = jnp.float32(_BIG_DIST)
    p_valid = (pm_col_ref[...] > 0.5) & (pm_row_ref[...] > 0.5)   # (TM,1)&(1,TN)
    m_valid = (mm_col_ref[...] > 0.5) & (mm_row_ref[...] > 0.5)
    dp_ref[...] = jnp.where(p_valid, d, big).astype(dp_ref.dtype)
    dm_ref[...] = jnp.where(m_valid, d, big).astype(dm_ref.dtype)


def _pick_tile(n, max_tile, align):
    """Largest multiple of `align` that divides n and is <= max_tile (or n)."""
    if n <= max_tile or n % align != 0:
        return n
    t = (max_tile // align) * align
    while n % t != 0:
        t -= align
    return t


def masked_pairwise_distances(p_pts, m_pts, H, W, *, out_dtype=jnp.bfloat16,
                              max_tm=256, max_tn=1024):
    """p_pts/m_pts: (B, H, W) point masks in {0,1}.  Returns two (B, N, N)
    distance matrices (N = H*W, row-major), invalid pairs set to _BIG_DIST."""
    B = p_pts.shape[0]
    N = H * W
    tm = _pick_tile(N, max_tm, 8)     # sublane tile, multiple of 8 (or N)
    tn = _pick_tile(N, max_tn, 128)   # lane tile, multiple of 128 (or N)

    idx = jnp.arange(N, dtype=jnp.int32)
    rows = (idx // W).astype(jnp.float32)
    cols = (idx % W).astype(jnp.float32)
    coords_q = jnp.stack([rows, cols], axis=0)    # (2, N): lane-dense tiles
    coords_p = jnp.stack([rows, cols], axis=1)    # (N, 2): sublane-axis tiles

    # two free views of each mask (row tile / column tile of the same data)
    pm_row = p_pts.reshape(B, 1, N)
    pm_col = p_pts.reshape(B, N, 1)
    mm_row = m_pts.reshape(B, 1, N)
    mm_col = m_pts.reshape(B, N, 1)

    out_spec = pl.BlockSpec((None, tm, tn), lambda b, i, j: (b, i, j))
    return pl.pallas_call(
        _pdist_kernel,
        grid=(B, N // tm, N // tn),
        in_specs=[
            pl.BlockSpec((2, tn), lambda b, i, j: (0, j)),            # coords_q
            pl.BlockSpec((tm, 2), lambda b, i, j: (i, 0)),            # coords_p
            pl.BlockSpec((None, 1, tn), lambda b, i, j: (b, 0, j)),   # pm_row
            pl.BlockSpec((None, tm, 1), lambda b, i, j: (b, i, 0)),   # pm_col
            pl.BlockSpec((None, 1, tn), lambda b, i, j: (b, 0, j)),   # mm_row
            pl.BlockSpec((None, tm, 1), lambda b, i, j: (b, i, 0)),   # mm_col
        ],
        out_specs=(out_spec, out_spec),
        out_shape=(jax.ShapeDtypeStruct((B, N, N), out_dtype),
                   jax.ShapeDtypeStruct((B, N, N), out_dtype)),
        compiler_params=pltpu.CompilerParams(
            dimension_semantics=("parallel", "parallel", "parallel"),
            vmem_limit_bytes=_VMEM_LIMIT),
    )(coords_q, coords_p, pm_row, pm_col, mm_row, mm_col)


# ----------------------------------------------------------------------------
# Front-end mirroring Topological_Loss.forward up to the topological step
# ----------------------------------------------------------------------------
class TopologicalLossPallas:
    def __init__(self, lam=3e-05, dimension=1, point_threshold=5, radius=1,
                 n_points_rate=8, loss_norm=2, dist_dtype=jnp.bfloat16):
        self.lam = lam
        self.dimension = dimension
        self.point_threshold = point_threshold
        self.radius = radius
        self.n_points = n_points_rate * radius
        self.loss_norm = loss_norm
        # bf16 halves HBM writeback of the (B, N, N) matrices; pixel-coordinate
        # distances are well within bf16 range for VR filtration thresholds.
        self.dist_dtype = dist_dtype

    def __call__(self, model_output, labels):
        # torch.squeeze(x, dim=1): channel dim must be 1.  Keep the incoming
        # dtype (cast happens in-kernel) to avoid an extra HBM pass.
        pred = jnp.squeeze(model_output, axis=1)
        lab = jnp.squeeze(labels, axis=1)
        B, H, W = pred.shape

        # Pallas hot path 1: sigmoid + mean-threshold + uniform LBP + point mask
        p_pts, m_pts = lbp_point_masks(
            pred, lab, n_points=self.n_points, radius=self.radius,
            point_threshold=self.point_threshold)

        # Pallas hot path 2: tiled masked pairwise-distance matrices of the
        # selected pixel coordinates (input of the Vietoris-Rips filtration).
        # Pairs touching a non-selected pixel carry the _BIG_DIST sentinel;
        # downstream must drop those rows/cols (or treat _BIG_DIST as beyond
        # the maximum filtration value) to match the reference, which builds
        # the complex only from the selected points.
        dist_pred, dist_mask = masked_pairwise_distances(
            p_pts, m_pts, H, W, out_dtype=self.dist_dtype)

        # TODO(synk): np.random.choice subsampling of points_p, the
        # Vietoris-Rips persistence-diagram computation (sequential
        # boundary-matrix reduction) and SummaryStatisticLoss over the
        # resulting diagrams have no clean Pallas equivalent; the final scalar
        # `lam * totalloss / B` is therefore not produced here.
        return {
            "pred_point_mask": p_pts,   # (B, H, W), 1.0 where LBP < threshold
            "mask_point_mask": m_pts,   # (B, H, W)
            "pred_dist": dist_pred,     # (B, H*W, H*W) masked distance matrix
            "mask_dist": dist_mask,     # (B, H*W, H*W)
            "lam": jnp.float32(self.lam),
        }


if __name__ == "__main__":
    key = jax.random.PRNGKey(0)
    k1, k2 = jax.random.split(key)
    B, C, H, W = 2, 1, 16, 16
    model_output = jax.random.normal(k1, (B, C, H, W), dtype=jnp.float32)
    labels = (jax.random.uniform(k2, (B, C, H, W)) > 0.5).astype(jnp.float32)

    loss_mod = TopologicalLossPallas()
    out = loss_mod(model_output, labels)
    out = jax.block_until_ready(out)
    print("KERNEL_OK")
</pallas_src>

<mosaic_0001>
module attributes {stable_mosaic.version = 11 : i64} {
  func.func @kernel(%arg0: i32, %arg1: memref<2x16x16xf32, #tpu.memory_space<vmem>>, %arg2: memref<2x16x16xf32, #tpu.memory_space<vmem>>, %arg3: memref<2x16x16xf32, #tpu.memory_space<vmem>>, %arg4: memref<2x16x16xf32, #tpu.memory_space<vmem>>) attributes {dimension_semantics = [#tpu.dimension_semantics<parallel>], iteration_bounds = array<i64: 1>, scalar_prefetch = 0 : i64, scratch_operands = 0 : i64, tpu.core_type = #tpu.core_type<tc>, window_params = [{transform_indices = @transform_0, window_bounds = array<i64: 2, 16, 16>}, {transform_indices = @transform_1, window_bounds = array<i64: 2, 16, 16>}, {transform_indices = @transform_2, window_bounds = array<i64: 2, 16, 16>}, {transform_indices = @transform_3, window_bounds = array<i64: 2, 16, 16>}]} {
    %0 = tpu.iota {dimensions = array<i32: 1>} : vector<1x16x16xi32>
    %1 = tpu.iota {dimensions = array<i32: 2>} : vector<1x16x16xi32>
    %c-1_i32 = arith.constant -1 : i32
    %2 = vector.broadcast %c-1_i32 : i32 to vector<1x16x16xi32>
    %3 = arith.addi %0, %2 : vector<1x16x16xi32>
    %c0_i32 = arith.constant 0 : i32
    %4 = vector.broadcast %c0_i32 : i32 to vector<1x16x16xi32>
    %5 = arith.cmpi sge, %3, %4 : vector<1x16x16xi32>
    %c-1_i32_0 = arith.constant -1 : i32
    %6 = vector.broadcast %c-1_i32_0 : i32 to vector<1x16x16xi32>
    %7 = arith.addi %0, %6 : vector<1x16x16xi32>
    %c16_i32 = arith.constant 16 : i32
    %8 = vector.broadcast %c16_i32 : i32 to vector<1x16x16xi32>
    %9 = arith.cmpi slt, %7, %8 : vector<1x16x16xi32>
    %10 = arith.andi %5, %9 : vector<1x16x16xi1>
    %c-1_i32_1 = arith.constant -1 : i32
    %11 = vector.broadcast %c-1_i32_1 : i32 to vector<1x16x16xi32>
    %12 = arith.addi %1, %11 : vector<1x16x16xi32>
    %c0_i32_2 = arith.constant 0 : i32
    %13 = vector.broadcast %c0_i32_2 : i32 to vector<1x16x16xi32>
    %14 = arith.cmpi sge, %12, %13 : vector<1x16x16xi32>
    %15 = arith.andi %10, %14 : vector<1x16x16xi1>
    %c-1_i32_3 = arith.constant -1 : i32
    %16 = vector.broadcast %c-1_i32_3 : i32 to vector<1x16x16xi32>
    %17 = arith.addi %1, %16 : vector<1x16x16xi32>
    %c16_i32_4 = arith.constant 16 : i32
    %18 = vector.broadcast %c16_i32_4 : i32 to vector<1x16x16xi32>
    %19 = arith.cmpi slt, %17, %18 : vector<1x16x16xi32>
    %20 = arith.andi %15, %19 : vector<1x16x16xi1>
    %c-1_i32_5 = arith.constant -1 : i32
    %21 = vector.broadcast %c-1_i32_5 : i32 to vector<1x16x16xi32>
    %22 = arith.addi %0, %21 : vector<1x16x16xi32>
    %c0_i32_6 = arith.constant 0 : i32
    %23 = vector.broadcast %c0_i32_6 : i32 to vector<1x16x16xi32>
    %24 = arith.cmpi sge, %22, %23 : vector<1x16x16xi32>
    %c-1_i32_7 = arith.constant -1 : i32
    %25 = vector.broadcast %c-1_i32_7 : i32 to vector<1x16x16xi32>
    %26 = arith.addi %0, %25 : vector<1x16x16xi32>
    %c16_i32_8 = arith.constant 16 : i32
    %27 = vector.broadcast %c16_i32_8 : i32 to vector<1x16x16xi32>
    %28 = arith.cmpi slt, %26, %27 : vector<1x16x16xi32>
    %29 = arith.andi %24, %28 : vector<1x16x16xi1>
    %c0_i32_9 = arith.constant 0 : i32
    %30 = vector.broadcast %c0_i32_9 : i32 to vector<1x16x16xi32>
    %31 = arith.addi %1, %30 : vector<1x16x16xi32>
    %c0_i32_10 = arith.constant 0 : i32
    %32 = vector.broadcast %c0_i32_10 : i32 to vector<1x16x16xi32>
    %33 = arith.cmpi sge, %31, %32 : vector<1x16x16xi32>
    %34 = arith.andi %29, %33 : vector<1x16x16xi1>
    %c0_i32_11 = arith.constant 0 : i32
    %35 = vector.broadcast %c0_i32_11 : i32 to vector<1x16x16xi32>
    %36 = arith.addi %1, %35 : vector<1x16x16xi32>
    %c16_i32_12 = arith.constant 16 : i32
    %37 = vector.broadcast %c16_i32_12 : i32 to vector<1x16x16xi32>
    %38 = arith.cmpi slt, %36, %37 : vector<1x16x16xi32>
    %39 = arith.andi %34, %38 : vector<1x16x16xi1>
    %c-1_i32_13 = arith.constant -1 : i32
    %40 = vector.broadcast %c-1_i32_13 : i32 to vector<1x16x16xi32>
    %41 = arith.addi %0, %40 : vector<1x16x16xi32>
    %c0_i32_14 = arith.constant 0 : i32
    %42 = vector.broadcast %c0_i32_14 : i32 to vector<1x16x16xi32>
    %43 = arith.cmpi sge, %41, %42 : vector<1x16x16xi32>
    %c-1_i32_15 = arith.constant -1 : i32
    %44 = vector.broadcast %c-1_i32_15 : i32 to vector<1x16x16xi32>
    %45 = arith.addi %0, %44 : vector<1x16x16xi32>
    %c16_i32_16 = arith.constant 16 : i32
    %46 = vector.broadcast %c16_i32_16 : i32 to vector<1x16x16xi32>
    %47 = arith.cmpi slt, %45, %46 : vector<1x16x16xi32>
    %48 = arith.andi %43, %47 : vector<1x16x16xi1>
    %c1_i32 = arith.constant 1 : i32
    %49 = vector.broadcast %c1_i32 : i32 to vector<1x16x16xi32>
    %50 = arith.addi %1, %49 : vector<1x16x16xi32>
    %c0_i32_17 = arith.constant 0 : i32
    %51 = vector.broadcast %c0_i32_17 : i32 to vector<1x16x16xi32>
    %52 = arith.cmpi sge, %50, %51 : vector<1x16x16xi32>
    %53 = arith.andi %48, %52 : vector<1x16x16xi1>
    %c1_i32_18 = arith.constant 1 : i32
    %54 = vector.broadcast %c1_i32_18 : i32 to vector<1x16x16xi32>
    %55 = arith.addi %1, %54 : vector<1x16x16xi32>
    %c16_i32_19 = arith.constant 16 : i32
    %56 = vector.broadcast %c16_i32_19 : i32 to vector<1x16x16xi32>
    %57 = arith.cmpi slt, %55, %56 : vector<1x16x16xi32>
    %58 = arith.andi %53, %57 : vector<1x16x16xi1>
    %c0_i32_20 = arith.constant 0 : i32
    %59 = vector.broadcast %c0_i32_20 : i32 to vector<1x16x16xi32>
    %60 = arith.addi %0, %59 : vector<1x16x16xi32>
    %c0_i32_21 = arith.constant 0 : i32
    %61 = vector.broadcast %c0_i32_21 : i32 to vector<1x16x16xi32>
    %62 = arith.cmpi sge, %60, %61 : vector<1x16x16xi32>
    %c0_i32_22 = arith.constant 0 : i32
    %63 = vector.broadcast %c0_i32_22 : i32 to vector<1x16x16xi32>
    %64 = arith.addi %0, %63 : vector<1x16x16xi32>
    %c16_i32_23 = arith.constant 16 : i32
    %65 = vector.broadcast %c16_i32_23 : i32 to vector<1x16x16xi32>
    %66 = arith.cmpi slt, %64, %65 : vector<1x16x16xi32>
    %67 = arith.andi %62, %66 : vector<1x16x16xi1>
    %c-1_i32_24 = arith.constant -1 : i32
    %68 = vector.broadcast %c-1_i32_24 : i32 to vector<1x16x16xi32>
    %69 = arith.addi %1, %68 : vector<1x16x16xi32>
    %c0_i32_25 = arith.constant 0 : i32
    %70 = vector.broadcast %c0_i32_25 : i32 to vector<1x16x16xi32>
    %71 = arith.cmpi sge, %69, %70 : vector<1x16x16xi32>
    %72 = arith.andi %67, %71 : vector<1x16x16xi1>
    %c-1_i32_26 = arith.constant -1 : i32
    %73 = vector.broadcast %c-1_i32_26 : i32 to vector<1x16x16xi32>
    %74 = arith.addi %1, %73 : vector<1x16x16xi32>
    %c16_i32_27 = arith.constant 16 : i32
    %75 = vector.broadcast %c16_i32_27 : i32 to vector<1x16x16xi32>
    %76 = arith.cmpi slt, %74, %75 : vector<1x16x16xi32>
    %77 = arith.andi %72, %76 : vector<1x16x16xi1>
    %c0_i32_28 = arith.constant 0 : i32
    %78 = vector.broadcast %c0_i32_28 : i32 to vector<1x16x16xi32>
    %79 = arith.addi %0, %78 : vector<1x16x16xi32>
    %c0_i32_29 = arith.constant 0 : i32
    %80 = vector.broadcast %c0_i32_29 : i32 to vector<1x16x16xi32>
    %81 = arith.cmpi sge, %79, %80 : vector<1x16x16xi32>
    %c0_i32_30 = arith.constant 0 : i32
    %82 = vector.broadcast %c0_i32_30 : i32 to vector<1x16x16xi32>
    %83 = arith.addi %0, %82 : vector<1x16x16xi32>
    %c16_i32_31 = arith.constant 16 : i32
    %84 = vector.broadcast %c16_i32_31 : i32 to vector<1x16x16xi32>
    %85 = arith.cmpi slt, %83, %84 : vector<1x16x16xi32>
    %86 = arith.andi %81, %85 : vector<1x16x16xi1>
    %c1_i32_32 = arith.constant 1 : i32
    %87 = vector.broadcast %c1_i32_32 : i32 to vector<1x16x16xi32>
    %88 = arith.addi %1, %87 : vector<1x16x16xi32>
    %c0_i32_33 = arith.constant 0 : i32
    %89 = vector.broadcast %c0_i32_33 : i32 to vector<1x16x16xi32>
    %90 = arith.cmpi sge, %88, %89 : vector<1x16x16xi32>
    %91 = arith.andi %86, %90 : vector<1x16x16xi1>
    %c1_i32_34 = arith.constant 1 : i32
    %92 = vector.broadcast %c1_i32_34 : i32 to vector<1x16x16xi32>
    %93 = arith.addi %1, %92 : vector<1x16x16xi32>
    %c16_i32_35 = arith.constant 16 : i32
    %94 = vector.broadcast %c16_i32_35 : i32 to vector<1x16x16xi32>
    %95 = arith.cmpi slt, %93, %94 : vector<1x16x16xi32>
    %96 = arith.andi %91, %95 : vector<1x16x16xi1>
    %c1_i32_36 = arith.constant 1 : i32
    %97 = vector.broadcast %c1_i32_36 : i32 to vector<1x16x16xi32>
    %98 = arith.addi %0, %97 : vector<1x16x16xi32>
    %c0_i32_37 = arith.constant 0 : i32
    %99 = vector.broadcast %c0_i32_37 : i32 to vector<1x16x16xi32>
    %100 = arith.cmpi sge, %98, %99 : vector<1x16x16xi32>
    %c1_i32_38 = arith.constant 1 : i32
    %101 = vector.broadcast %c1_i32_38 : i32 to vector<1x16x16xi32>
    %102 = arith.addi %0, %101 : vector<1x16x16xi32>
    %c16_i32_39 = arith.constant 16 : i32
    %103 = vector.broadcast %c16_i32_39 : i32 to vector<1x16x16xi32>
    %104 = arith.cmpi slt, %102, %103 : vector<1x16x16xi32>
    %105 = arith.andi %100, %104 : vector<1x16x16xi1>
    %c-1_i32_40 = arith.constant -1 : i32
    %106 = vector.broadcast %c-1_i32_40 : i32 to vector<1x16x16xi32>
    %107 = arith.addi %1, %106 : vector<1x16x16xi32>
    %c0_i32_41 = arith.constant 0 : i32
    %108 = vector.broadcast %c0_i32_41 : i32 to vector<1x16x16xi32>
    %109 = arith.cmpi sge, %107, %108 : vector<1x16x16xi32>
    %110 = arith.andi %105, %109 : vector<1x16x16xi1>
    %c-1_i32_42 = arith.constant -1 : i32
    %111 = vector.broadcast %c-1_i32_42 : i32 to vector<1x16x16xi32>
    %112 = arith.addi %1, %111 : vector<1x16x16xi32>
    %c16_i32_43 = arith.constant 16 : i32
    %113 = vector.broadcast %c16_i32_43 : i32 to vector<1x16x16xi32>
    %114 = arith.cmpi slt, %112, %113 : vector<1x16x16xi32>
    %115 = arith.andi %110, %114 : vector<1x16x16xi1>
    %c1_i32_44 = arith.constant 1 : i32
    %116 = vector.broadcast %c1_i32_44 : i32 to vector<1x16x16xi32>
    %117 = arith.addi %0, %116 : vector<1x16x16xi32>
    %c0_i32_45 = arith.constant 0 : i32
    %118 = vector.broadcast %c0_i32_45 : i32 to vector<1x16x16xi32>
    %119 = arith.cmpi sge, %117, %118 : vector<1x16x16xi32>
    %c1_i32_46 = arith.constant 1 : i32
    %120 = vector.broadcast %c1_i32_46 : i32 to vector<1x16x16xi32>
    %121 = arith.addi %0, %120 : vector<1x16x16xi32>
    %c16_i32_47 = arith.constant 16 : i32
    %122 = vector.broadcast %c16_i32_47 : i32 to vector<1x16x16xi32>
    %123 = arith.cmpi slt, %121, %122 : vector<1x16x16xi32>
    %124 = arith.andi %119, %123 : vector<1x16x16xi1>
    %c0_i32_48 = arith.constant 0 : i32
    %125 = vector.broadcast %c0_i32_48 : i32 to vector<1x16x16xi32>
    %126 = arith.addi %1, %125 : vector<1x16x16xi32>
    %c0_i32_49 = arith.constant 0 : i32
    %127 = vector.broadcast %c0_i32_49 : i32 to vector<1x16x16xi32>
    %128 = arith.cmpi sge, %126, %127 : vector<1x16x16xi32>
    %129 = arith.andi %124, %128 : vector<1x16x16xi1>
    %c0_i32_50 = arith.constant 0 : i32
    %130 = vector.broadcast %c0_i32_50 : i32 to vector<1x16x16xi32>
    %131 = arith.addi %1, %130 : vector<1x16x16xi32>
    %c16_i32_51 = arith.constant 16 : i32
    %132 = vector.broadcast %c16_i32_51 : i32 to vector<1x16x16xi32>
    %133 = arith.cmpi slt, %131, %132 : vector<1x16x16xi32>
    %134 = arith.andi %129, %133 : vector<1x16x16xi1>
    %c1_i32_52 = arith.constant 1 : i32
    %135 = vector.broadcast %c1_i32_52 : i32 to vector<1x16x16xi32>
    %136 = arith.addi %0, %135 : vector<1x16x16xi32>
    %c0_i32_53 = arith.constant 0 : i32
    %137 = vector.broadcast %c0_i32_53 : i32 to vector<1x16x16xi32>
    %138 = arith.cmpi sge, %136, %137 : vector<1x16x16xi32>
    %c1_i32_54 = arith.constant 1 : i32
    %139 = vector.broadcast %c1_i32_54 : i32 to vector<1x16x16xi32>
    %140 = arith.addi %0, %139 : vector<1x16x16xi32>
    %c16_i32_55 = arith.constant 16 : i32
    %141 = vector.broadcast %c16_i32_55 : i32 to vector<1x16x16xi32>
    %142 = arith.cmpi slt, %140, %141 : vector<1x16x16xi32>
    %143 = arith.andi %138, %142 : vector<1x16x16xi1>
    %c1_i32_56 = arith.constant 1 : i32
    %144 = vector.broadcast %c1_i32_56 : i32 to vector<1x16x16xi32>
    %145 = arith.addi %1, %144 : vector<1x16x16xi32>
    %c0_i32_57 = arith.constant 0 : i32
    %146 = vector.broadcast %c0_i32_57 : i32 to vector<1x16x16xi32>
    %147 = arith.cmpi sge, %145, %146 : vector<1x16x16xi32>
    %148 = arith.andi %143, %147 : vector<1x16x16xi1>
    %c1_i32_58 = arith.constant 1 : i32
    %149 = vector.broadcast %c1_i32_58 : i32 to vector<1x16x16xi32>
    %150 = arith.addi %1, %149 : vector<1x16x16xi32>
    %c16_i32_59 = arith.constant 16 : i32
    %151 = vector.broadcast %c16_i32_59 : i32 to vector<1x16x16xi32>
    %152 = arith.cmpi slt, %150, %151 : vector<1x16x16xi32>
    %153 = arith.andi %148, %152 : vector<1x16x16xi1>
    %c0 = arith.constant 0 : index
    %c0_60 = arith.constant 0 : index
    %c0_61 = arith.constant 0 : index
    %154 = vector.load %arg1[%c0, %c0_60, %c0_61] : memref<2x16x16xf32, #tpu.memory_space<vmem>>, vector<2x16x16xf32>
    %155 = arith.negf %154 : vector<2x16x16xf32>
    %156 = math.exp %155 : vector<2x16x16xf32>
    %cst = arith.constant 1.000000e+00 : f32
    %157 = vector.broadcast %cst : f32 to vector<2x16x16xf32>
    %158 = arith.addf %157, %156 : vector<2x16x16xf32>
    %159 = arith.divf %157, %158 : vector<2x16x16xf32>
    %cst_62 = arith.constant dense<0.000000e+00> : vector<2x16xf32>
    %160 = vector.multi_reduction <add>, %159, %cst_62 [2] : vector<2x16x16xf32> to vector<2x16xf32>
    %161 = vector.shape_cast %160 : vector<2x16xf32> to vector<2x16x1xf32>
    %cst_63 = arith.constant dense<0.000000e+00> : vector<2x1xf32>
    %162 = vector.multi_reduction <add>, %161, %cst_63 [1] : vector<2x16x1xf32> to vector<2x1xf32>
    %163 = vector.shape_cast %162 : vector<2x1xf32> to vector<2x1x1xf32>
    %cst_64 = arith.constant 3.906250e-03 : f32
    %164 = vector.broadcast %cst_64 : f32 to vector<2x1x1xf32>
    %165 = arith.mulf %163, %164 : vector<2x1x1xf32>
    %166 = vector.broadcast %165 : vector<2x1x1xf32> to vector<2x16x16xf32>
    %167 = arith.cmpf ogt, %159, %166 : vector<2x16x16xf32>
    %168 = arith.extui %167 : vector<2x16x16xi1> to vector<2x16x16xi32>
    %169 = arith.sitofp %168 : vector<2x16x16xi32> to vector<2x16x16xf32>
    %170 = vector.extract_strided_slice %169 {offsets = [0, 15, 0], sizes = [2, 1, 16], strides = [1, 1, 1]} : vector<2x16x16xf32> to vector<2x1x16xf32>
    %171 = vector.extract_strided_slice %169 {offsets = [0, 0, 0], sizes = [2, 15, 16], strides = [1, 1, 1]} : vector<2x16x16xf32> to vector<2x15x16xf32>
    %172 = tpu.concatenate %170, %171 in 1 : vector<2x1x16xf32>, vector<2x15x16xf32> -> vector<2x16x16xf32>
    %173 = vector.extract_strided_slice %169 {offsets = [0, 1, 0], sizes = [2, 15, 16], strides = [1, 1, 1]} : vector<2x16x16xf32> to vector<2x15x16xf32>
    %174 = vector.extract_strided_slice %169 {offsets = [0, 0, 0], sizes = [2, 1, 16], strides = [1, 1, 1]} : vector<2x16x16xf32> to vector<2x1x16xf32>
    %175 = tpu.concatenate %173, %174 in 1 : vector<2x15x16xf32>, vector<2x1x16xf32> -> vector<2x16x16xf32>
    %176 = vector.extract_strided_slice %172 {offsets = [0, 0, 15], sizes = [2, 16, 1], strides = [1, 1, 1]} : vector<2x16x16xf32> to vector<2x16x1xf32>
    %177 = vector.extract_strided_slice %172 {offsets = [0, 0, 0], sizes = [2, 16, 15], strides = [1, 1, 1]} : vector<2x16x16xf32> to vector<2x16x15xf32>
    %178 = tpu.concatenate %176, %177 in 2 : vector<2x16x1xf32>, vector<2x16x15xf32> -> vector<2x16x16xf32>
    %cst_65 = arith.constant 0.000000e+00 : f32
    %179 = vector.shape_cast %20 : vector<1x16x16xi1> to vector<1x16x16xi1>
    %180 = vector.broadcast %179 : vector<1x16x16xi1> to vector<2x16x16xi1>
    %181 = vector.broadcast %cst_65 : f32 to vector<2x16x16xf32>
    %182 = arith.select %180, %178, %181 : vector<2x16x16xi1>, vector<2x16x16xf32>
    %cst_66 = arith.constant 0.000000e+00 : f32
    %183 = vector.shape_cast %39 : vector<1x16x16xi1> to vector<1x16x16xi1>
    %184 = vector.broadcast %183 : vector<1x16x16xi1> to vector<2x16x16xi1>
    %185 = vector.broadcast %cst_66 : f32 to vector<2x16x16xf32>
    %186 = arith.select %184, %172, %185 : vector<2x16x16xi1>, vector<2x16x16xf32>
    %187 = vector.extract_strided_slice %172 {offsets = [0, 0, 1], sizes = [2, 16, 15], strides = [1, 1, 1]} : vector<2x16x16xf32> to vector<2x16x15xf32>
    %188 = vector.extract_strided_slice %172 {offsets = [0, 0, 0], sizes = [2, 16, 1], strides = [1, 1, 1]} : vector<2x16x16xf32> to vector<2x16x1xf32>
    %189 = tpu.concatenate %187, %188 in 2 : vector<2x16x15xf32>, vector<2x16x1xf32> -> vector<2x16x16xf32>
    %cst_67 = arith.constant 0.000000e+00 : f32
    %190 = vector.shape_cast %58 : vector<1x16x16xi1> to vector<1x16x16xi1>
    %191 = vector.broadcast %190 : vector<1x16x16xi1> to vector<2x16x16xi1>
    %192 = vector.broadcast %cst_67 : f32 to vector<2x16x16xf32>
    %193 = arith.select %191, %189, %192 : vector<2x16x16xi1>, vector<2x16x16xf32>
    %194 = vector.extract_strided_slice %169 {offsets = [0, 0, 15], sizes = [2, 16, 1], strides = [1, 1, 1]} : vector<2x16x16xf32> to vector<2x16x1xf32>
    %195 = vector.extract_strided_slice %169 {offsets = [0, 0, 0], sizes = [2, 16, 15], strides = [1, 1, 1]} : vector<2x16x16xf32> to vector<2x16x15xf32>
    %196 = tpu.concatenate %194, %195 in 2 : vector<2x16x1xf32>, vector<2x16x15xf32> -> vector<2x16x16xf32>
    %cst_68 = arith.constant 0.000000e+00 : f32
    %197 = vector.shape_cast %77 : vector<1x16x16xi1> to vector<1x16x16xi1>
    %198 = vector.broadcast %197 : vector<1x16x16xi1> to vector<2x16x16xi1>
    %199 = vector.broadcast %cst_68 : f32 to vector<2x16x16xf32>
    %200 = arith.select %198, %196, %199 : vector<2x16x16xi1>, vector<2x16x16xf32>
    %201 = vector.extract_strided_slice %169 {offsets = [0, 0, 1], sizes = [2, 16, 15], strides = [1, 1, 1]} : vector<2x16x16xf32> to vector<2x16x15xf32>
    %202 = vector.extract_strided_slice %169 {offsets = [0, 0, 0], sizes = [2, 16, 1], strides = [1, 1, 1]} : vector<2x16x16xf32> to vector<2x16x1xf32>
    %203 = tpu.concatenate %201, %202 in 2 : vector<2x16x15xf32>, vector<2x16x1xf32> -> vector<2x16x16xf32>
    %cst_69 = arith.constant 0.000000e+00 : f32
    %204 = vector.shape_cast %96 : vector<1x16x16xi1> to vector<1x16x16xi1>
    %205 = vector.broadcast %204 : vector<1x16x16xi1> to vector<2x16x16xi1>
    %206 = vector.broadcast %cst_69 : f32 to vector<2x16x16xf32>
    %207 = arith.select %205, %203, %206 : vector<2x16x16xi1>, vector<2x16x16xf32>
    %208 = vector.extract_strided_slice %175 {offsets = [0, 0, 15], sizes = [2, 16, 1], strides = [1, 1, 1]} : vector<2x16x16xf32> to vector<2x16x1xf32>
    %209 = vector.extract_strided_slice %175 {offsets = [0, 0, 0], sizes = [2, 16, 15], strides = [1, 1, 1]} : vector<2x16x16xf32> to vector<2x16x15xf32>
    %210 = tpu.concatenate %208, %209 in 2 : vector<2x16x1xf32>, vector<2x16x15xf32> -> vector<2x16x16xf32>
    %cst_70 = arith.constant 0.000000e+00 : f32
    %211 = vector.shape_cast %115 : vector<1x16x16xi1> to vector<1x16x16xi1>
    %212 = vector.broadcast %211 : vector<1x16x16xi1> to vector<2x16x16xi1>
    %213 = vector.broadcast %cst_70 : f32 to vector<2x16x16xf32>
    %214 = arith.select %212, %210, %213 : vector<2x16x16xi1>, vector<2x16x16xf32>
    %cst_71 = arith.constant 0.000000e+00 : f32
    %215 = vector.shape_cast %134 : vector<1x16x16xi1> to vector<1x16x16xi1>
    %216 = vector.broadcast %215 : vector<1x16x16xi1> to vector<2x16x16xi1>
    %217 = vector.broadcast %cst_71 : f32 to vector<2x16x16xf32>
    %218 = arith.select %216, %175, %217 : vector<2x16x16xi1>, vector<2x16x16xf32>
    %219 = vector.extract_strided_slice %175 {offsets = [0, 0, 1], sizes = [2, 16, 15], strides = [1, 1, 1]} : vector<2x16x16xf32> to vector<2x16x15xf32>
    %220 = vector.extract_strided_slice %175 {offsets = [0, 0, 0], sizes = [2, 16, 1], strides = [1, 1, 1]} : vector<2x16x16xf32> to vector<2x16x1xf32>
    %221 = tpu.concatenate %219, %220 in 2 : vector<2x16x15xf32>, vector<2x16x1xf32> -> vector<2x16x16xf32>
    %cst_72 = arith.constant 0.000000e+00 : f32
    %222 = vector.shape_cast %153 : vector<1x16x16xi1> to vector<1x16x16xi1>
    %223 = vector.broadcast %222 : vector<1x16x16xi1> to vector<2x16x16xi1>
    %224 = vector.broadcast %cst_72 : f32 to vector<2x16x16xf32>
    %225 = arith.select %223, %221, %224 : vector<2x16x16xi1>, vector<2x16x16xf32>
    %cst_73 = arith.constant 9.99999974E-6 : f32
    %226 = vector.broadcast %cst_73 : f32 to vector<2x16x16xf32>
    %227 = arith.subf %169, %226 : vector<2x16x16xf32>
    %228 = arith.cmpf oge, %207, %227 : vector<2x16x16xf32>
    %229 = arith.extui %228 : vector<2x16x16xi1> to vector<2x16x16xi32>
    %230 = arith.sitofp %229 : vector<2x16x16xi32> to vector<2x16x16xf32>
    %cst_74 = arith.constant 0.207105443 : f32
    %231 = vector.broadcast %cst_74 : f32 to vector<2x16x16xf32>
    %232 = arith.mulf %231, %186 : vector<2x16x16xf32>
    %cst_75 = arith.constant 0.50000453 : f32
    %233 = vector.broadcast %cst_75 : f32 to vector<2x16x16xf32>
    %234 = arith.mulf %233, %193 : vector<2x16x16xf32>
    %235 = arith.addf %232, %234 : vector<2x16x16xf32>
    %cst_76 = arith.constant 0.0857845545 : f32
    %236 = vector.broadcast %cst_76 : f32 to vector<2x16x16xf32>
    %237 = arith.mulf %236, %169 : vector<2x16x16xf32>
    %238 = arith.addf %235, %237 : vector<2x16x16xf32>
    %cst_77 = arith.constant 0.207105443 : f32
    %239 = vector.broadcast %cst_77 : f32 to vector<2x16x16xf32>
    %240 = arith.mulf %239, %207 : vector<2x16x16xf32>
    %241 = arith.addf %238, %240 : vector<2x16x16xf32>
    %242 = arith.cmpf oge, %241, %227 : vector<2x16x16xf32>
    %243 = arith.extui %242 : vector<2x16x16xi1> to vector<2x16x16xi32>
    %244 = arith.sitofp %243 : vector<2x16x16xi32> to vector<2x16x16xf32>
    %245 = arith.cmpf oge, %186, %227 : vector<2x16x16xf32>
    %246 = arith.extui %245 : vector<2x16x16xi1> to vector<2x16x16xi32>
    %247 = arith.sitofp %246 : vector<2x16x16xi32> to vector<2x16x16xf32>
    %cst_78 = arith.constant 0.50000453 : f32
    %248 = vector.broadcast %cst_78 : f32 to vector<2x16x16xf32>
    %249 = arith.mulf %248, %182 : vector<2x16x16xf32>
    %cst_79 = arith.constant 0.207105443 : f32
    %250 = vector.broadcast %cst_79 : f32 to vector<2x16x16xf32>
    %251 = arith.mulf %250, %186 : vector<2x16x16xf32>
    %252 = arith.addf %249, %251 : vector<2x16x16xf32>
    %cst_80 = arith.constant 0.207105443 : f32
    %253 = vector.broadcast %cst_80 : f32 to vector<2x16x16xf32>
    %254 = arith.mulf %253, %200 : vector<2x16x16xf32>
    %255 = arith.addf %252, %254 : vector<2x16x16xf32>
    %cst_81 = arith.constant 0.0857845545 : f32
    %256 = vector.broadcast %cst_81 : f32 to vector<2x16x16xf32>
    %257 = arith.mulf %256, %169 : vector<2x16x16xf32>
    %258 = arith.addf %255, %257 : vector<2x16x16xf32>
    %259 = arith.cmpf oge, %258, %227 : vector<2x16x16xf32>
    %260 = arith.extui %259 : vector<2x16x16xi1> to vector<2x16x16xi32>
    %261 = arith.sitofp %260 : vector<2x16x16xi32> to vector<2x16x16xf32>
    %262 = arith.cmpf oge, %200, %227 : vector<2x16x16xf32>
    %263 = arith.extui %262 : vector<2x16x16xi1> to vector<2x16x16xi32>
    %264 = arith.sitofp %263 : vector<2x16x16xi32> to vector<2x16x16xf32>
    %cst_82 = arith.constant 0.207105443 : f32
    %265 = vector.broadcast %cst_82 : f32 to vector<2x16x16xf32>
    %266 = arith.mulf %265, %200 : vector<2x16x16xf32>
    %cst_83 = arith.constant 0.0857845545 : f32
    %267 = vector.broadcast %cst_83 : f32 to vector<2x16x16xf32>
    %268 = arith.mulf %267, %169 : vector<2x16x16xf32>
    %269 = arith.addf %266, %268 : vector<2x16x16xf32>
    %cst_84 = arith.constant 0.50000453 : f32
    %270 = vector.broadcast %cst_84 : f32 to vector<2x16x16xf32>
    %271 = arith.mulf %270, %214 : vector<2x16x16xf32>
    %272 = arith.addf %269, %271 : vector<2x16x16xf32>
    %cst_85 = arith.constant 0.207105443 : f32
    %273 = vector.broadcast %cst_85 : f32 to vector<2x16x16xf32>
    %274 = arith.mulf %273, %218 : vector<2x16x16xf32>
    %275 = arith.addf %272, %274 : vector<2x16x16xf32>
    %276 = arith.cmpf oge, %275, %227 : vector<2x16x16xf32>
    %277 = arith.extui %276 : vector<2x16x16xi1> to vector<2x16x16xi32>
    %278 = arith.sitofp %277 : vector<2x16x16xi32> to vector<2x16x16xf32>
    %279 = arith.cmpf oge, %218, %227 : vector<2x16x16xf32>
    %280 = arith.extui %279 : vector<2x16x16xi1> to vector<2x16x16xi32>
    %281 = arith.sitofp %280 : vector<2x16x16xi32> to vector<2x16x16xf32>
    %cst_86 = arith.constant 0.0857845545 : f32
    %282 = vector.broadcast %cst_86 : f32 to vector<2x16x16xf32>
    %283 = arith.mulf %282, %169 : vector<2x16x16xf32>
    %cst_87 = arith.constant 0.207105443 : f32
    %284 = vector.broadcast %cst_87 : f32 to vector<2x16x16xf32>
    %285 = arith.mulf %284, %207 : vector<2x16x16xf32>
    %286 = arith.addf %283, %285 : vector<2x16x16xf32>
    %cst_88 = arith.constant 0.207105443 : f32
    %287 = vector.broadcast %cst_88 : f32 to vector<2x16x16xf32>
    %288 = arith.mulf %287, %218 : vector<2x16x16xf32>
    %289 = arith.addf %286, %288 : vector<2x16x16xf32>
    %cst_89 = arith.constant 0.50000453 : f32
    %290 = vector.broadcast %cst_89 : f32 to vector<2x16x16xf32>
    %291 = arith.mulf %290, %225 : vector<2x16x16xf32>
    %292 = arith.addf %289, %291 : vector<2x16x16xf32>
    %293 = arith.cmpf oge, %292, %227 : vector<2x16x16xf32>
    %294 = arith.extui %293 : vector<2x16x16xi1> to vector<2x16x16xi32>
    %295 = arith.sitofp %294 : vector<2x16x16xi32> to vector<2x16x16xf32>
    %cst_90 = arith.constant 0.000000e+00 : f32
    %296 = vector.broadcast %cst_90 : f32 to vector<2x16x16xf32>
    %297 = arith.subf %230, %244 : vector<2x16x16xf32>
    %298 = math.absf %297 : vector<2x16x16xf32>
    %299 = arith.addf %296, %298 : vector<2x16x16xf32>
    %300 = arith.subf %244, %247 : vector<2x16x16xf32>
    %301 = math.absf %300 : vector<2x16x16xf32>
    %302 = arith.addf %299, %301 : vector<2x16x16xf32>
    %303 = arith.subf %247, %261 : vector<2x16x16xf32>
    %304 = math.absf %303 : vector<2x16x16xf32>
    %305 = arith.addf %302, %304 : vector<2x16x16xf32>
    %306 = arith.subf %261, %264 : vector<2x16x16xf32>
    %307 = math.absf %306 : vector<2x16x16xf32>
    %308 = arith.addf %305, %307 : vector<2x16x16xf32>
    %309 = arith.subf %264, %278 : vector<2x16x16xf32>
    %310 = math.absf %309 : vector<2x16x16xf32>
    %311 = arith.addf %308, %310 : vector<2x16x16xf32>
    %312 = arith.subf %278, %281 : vector<2x16x16xf32>
    %313 = math.absf %312 : vector<2x16x16xf32>
    %314 = arith.addf %311, %313 : vector<2x16x16xf32>
    %315 = arith.subf %281, %295 : vector<2x16x16xf32>
    %316 = math.absf %315 : vector<2x16x16xf32>
    %317 = arith.addf %314, %316 : vector<2x16x16xf32>
    %318 = arith.addf %230, %244 : vector<2x16x16xf32>
    %319 = arith.addf %318, %247 : vector<2x16x16xf32>
    %320 = arith.addf %319, %261 : vector<2x16x16xf32>
    %321 = arith.addf %320, %264 : vector<2x16x16xf32>
    %322 = arith.addf %321, %278 : vector<2x16x16xf32>
    %323 = arith.addf %322, %281 : vector<2x16x16xf32>
    %324 = arith.addf %323, %295 : vector<2x16x16xf32>
    %cst_91 = arith.constant 2.000000e+00 : f32
    %325 = vector.broadcast %cst_91 : f32 to vector<2x16x16xf32>
    %326 = arith.cmpf ole, %317, %325 : vector<2x16x16xf32>
    %cst_92 = arith.constant 9.000000e+00 : f32
    %327 = vector.broadcast %cst_92 : f32 to vector<2x16x16xf32>
    %328 = arith.select %326, %324, %327 : vector<2x16x16xi1>, vector<2x16x16xf32>
    %cst_93 = arith.constant 5.000000e+00 : f32
    %329 = vector.broadcast %cst_93 : f32 to vector<2x16x16xf32>
    %330 = arith.cmpf olt, %328, %329 : vector<2x16x16xf32>
    %331 = arith.extui %330 : vector<2x16x16xi1> to vector<2x16x16xi32>
    %332 = arith.sitofp %331 : vector<2x16x16xi32> to vector<2x16x16xf32>
    %c0_94 = arith.constant 0 : index
    %c0_95 = arith.constant 0 : index
    %c0_96 = arith.constant 0 : index
    %333 = vector.load %arg3[%c0_94, %c0_95, %c0_96] : memref<2x16x16xf32, #tpu.memory_space<vmem>>, vector<2x16x16xf32>
    tpu.vector_store %arg3[%c0_94, %c0_95, %c0_96], %332 {strides = array<i32>} : memref<2x16x16xf32, #tpu.memory_space<vmem>>, vector<2x16x16xf32>,
    %c0_97 = arith.constant 0 : index
    %c0_98 = arith.constant 0 : index
    %c0_99 = arith.constant 0 : index
    %334 = vector.load %arg2[%c0_97, %c0_98, %c0_99] : memref<2x16x16xf32, #tpu.memory_space<vmem>>, vector<2x16x16xf32>
    %cst_100 = arith.constant dense<0.000000e+00> : vector<2x16xf32>
    %335 = vector.multi_reduction <add>, %334, %cst_100 [2] : vector<2x16x16xf32> to vector<2x16xf32>
    %336 = vector.shape_cast %335 : vector<2x16xf32> to vector<2x16x1xf32>
    %cst_101 = arith.constant dense<0.000000e+00> : vector<2x1xf32>
    %337 = vector.multi_reduction <add>, %336, %cst_101 [1] : vector<2x16x1xf32> to vector<2x1xf32>
    %338 = vector.shape_cast %337 : vector<2x1xf32> to vector<2x1x1xf32>
    %cst_102 = arith.constant 3.906250e-03 : f32
    %339 = vector.broadcast %cst_102 : f32 to vector<2x1x1xf32>
    %340 = arith.mulf %338, %339 : vector<2x1x1xf32>
    %341 = vector.broadcast %340 : vector<2x1x1xf32> to vector<2x16x16xf32>
    %342 = arith.cmpf ogt, %334, %341 : vector<2x16x16xf32>
    %343 = arith.extui %342 : vector<2x16x16xi1> to vector<2x16x16xi32>
    %344 = arith.sitofp %343 : vector<2x16x16xi32> to vector<2x16x16xf32>
    %345 = vector.extract_strided_slice %344 {offsets = [0, 15, 0], sizes = [2, 1, 16], strides = [1, 1, 1]} : vector<2x16x16xf32> to vector<2x1x16xf32>
    %346 = vector.extract_strided_slice %344 {offsets = [0, 0, 0], sizes = [2, 15, 16], strides = [1, 1, 1]} : vector<2x16x16xf32> to vector<2x15x16xf32>
    %347 = tpu.concatenate %345, %346 in 1 : vector<2x1x16xf32>, vector<2x15x16xf32> -> vector<2x16x16xf32>
    %348 = vector.extract_strided_slice %344 {offsets = [0, 1, 0], sizes = [2, 15, 16], strides = [1, 1, 1]} : vector<2x16x16xf32> to vector<2x15x16xf32>
    %349 = vector.extract_strided_slice %344 {offsets = [0, 0, 0], sizes = [2, 1, 16], strides = [1, 1, 1]} : vector<2x16x16xf32> to vector<2x1x16xf32>
    %350 = tpu.concatenate %348, %349 in 1 : vector<2x15x16xf32>, vector<2x1x16xf32> -> vector<2x16x16xf32>
    %351 = vector.extract_strided_slice %347 {offsets = [0, 0, 15], sizes = [2, 16, 1], strides = [1, 1, 1]} : vector<2x16x16xf32> to vector<2x16x1xf32>
    %352 = vector.extract_strided_slice %347 {offsets = [0, 0, 0], sizes = [2, 16, 15], strides = [1, 1, 1]} : vector<2x16x16xf32> to vector<2x16x15xf32>
    %353 = tpu.concatenate %351, %352 in 2 : vector<2x16x1xf32>, vector<2x16x15xf32> -> vector<2x16x16xf32>
    %cst_103 = arith.constant 0.000000e+00 : f32
    %354 = vector.shape_cast %20 : vector<1x16x16xi1> to vector<1x16x16xi1>
    %355 = vector.broadcast %354 : vector<1x16x16xi1> to vector<2x16x16xi1>
    %356 = vector.broadcast %cst_103 : f32 to vector<2x16x16xf32>
    %357 = arith.select %355, %353, %356 : vector<2x16x16xi1>, vector<2x16x16xf32>
    %cst_104 = arith.constant 0.000000e+00 : f32
    %358 = vector.shape_cast %39 : vector<1x16x16xi1> to vector<1x16x16xi1>
    %359 = vector.broadcast %358 : vector<1x16x16xi1> to vector<2x16x16xi1>
    %360 = vector.broadcast %cst_104 : f32 to vector<2x16x16xf32>
    %361 = arith.select %359, %347, %360 : vector<2x16x16xi1>, vector<2x16x16xf32>
    %362 = vector.extract_strided_slice %347 {offsets = [0, 0, 1], sizes = [2, 16, 15], strides = [1, 1, 1]} : vector<2x16x16xf32> to vector<2x16x15xf32>
    %363 = vector.extract_strided_slice %347 {offsets = [0, 0, 0], sizes = [2, 16, 1], strides = [1, 1, 1]} : vector<2x16x16xf32> to vector<2x16x1xf32>
    %364 = tpu.concatenate %362, %363 in 2 : vector<2x16x15xf32>, vector<2x16x1xf32> -> vector<2x16x16xf32>
    %cst_105 = arith.constant 0.000000e+00 : f32
    %365 = vector.shape_cast %58 : vector<1x16x16xi1> to vector<1x16x16xi1>
    %366 = vector.broadcast %365 : vector<1x16x16xi1> to vector<2x16x16xi1>
    %367 = vector.broadcast %cst_105 : f32 to vector<2x16x16xf32>
    %368 = arith.select %366, %364, %367 : vector<2x16x16xi1>, vector<2x16x16xf32>
    %369 = vector.extract_strided_slice %344 {offsets = [0, 0, 15], sizes = [2, 16, 1], strides = [1, 1, 1]} : vector<2x16x16xf32> to vector<2x16x1xf32>
    %370 = vector.extract_strided_slice %344 {offsets = [0, 0, 0], sizes = [2, 16, 15], strides = [1, 1, 1]} : vector<2x16x16xf32> to vector<2x16x15xf32>
    %371 = tpu.concatenate %369, %370 in 2 : vector<2x16x1xf32>, vector<2x16x15xf32> -> vector<2x16x16xf32>
    %cst_106 = arith.constant 0.000000e+00 : f32
    %372 = vector.shape_cast %77 : vector<1x16x16xi1> to vector<1x16x16xi1>
    %373 = vector.broadcast %372 : vector<1x16x16xi1> to vector<2x16x16xi1>
    %374 = vector.broadcast %cst_106 : f32 to vector<2x16x16xf32>
    %375 = arith.select %373, %371, %374 : vector<2x16x16xi1>, vector<2x16x16xf32>
    %376 = vector.extract_strided_slice %344 {offsets = [0, 0, 1], sizes = [2, 16, 15], strides = [1, 1, 1]} : vector<2x16x16xf32> to vector<2x16x15xf32>
    %377 = vector.extract_strided_slice %344 {offsets = [0, 0, 0], sizes = [2, 16, 1], strides = [1, 1, 1]} : vector<2x16x16xf32> to vector<2x16x1xf32>
    %378 = tpu.concatenate %376, %377 in 2 : vector<2x16x15xf32>, vector<2x16x1xf32> -> vector<2x16x16xf32>
    %cst_107 = arith.constant 0.000000e+00 : f32
    %379 = vector.shape_cast %96 : vector<1x16x16xi1> to vector<1x16x16xi1>
    %380 = vector.broadcast %379 : vector<1x16x16xi1> to vector<2x16x16xi1>
    %381 = vector.broadcast %cst_107 : f32 to vector<2x16x16xf32>
    %382 = arith.select %380, %378, %381 : vector<2x16x16xi1>, vector<2x16x16xf32>
    %383 = vector.extract_strided_slice %350 {offsets = [0, 0, 15], sizes = [2, 16, 1], strides = [1, 1, 1]} : vector<2x16x16xf32> to vector<2x16x1xf32>
    %384 = vector.extract_strided_slice %350 {offsets = [0, 0, 0], sizes = [2, 16, 15], strides = [1, 1, 1]} : vector<2x16x16xf32> to vector<2x16x15xf32>
    %385 = tpu.concatenate %383, %384 in 2 : vector<2x16x1xf32>, vector<2x16x15xf32> -> vector<2x16x16xf32>
    %cst_108 = arith.constant 0.000000e+00 : f32
    %386 = vector.shape_cast %115 : vector<1x16x16xi1> to vector<1x16x16xi1>
    %387 = vector.broadcast %386 : vector<1x16x16xi1> to vector<2x16x16xi1>
    %388 = vector.broadcast %cst_108 : f32 to vector<2x16x16xf32>
    %389 = arith.select %387, %385, %388 : vector<2x16x16xi1>, vector<2x16x16xf32>
    %cst_109 = arith.constant 0.000000e+00 : f32
    %390 = vector.shape_cast %134 : vector<1x16x16xi1> to vector<1x16x16xi1>
    %391 = vector.broadcast %390 : vector<1x16x16xi1> to vector<2x16x16xi1>
    %392 = vector.broadcast %cst_109 : f32 to vector<2x16x16xf32>
    %393 = arith.select %391, %350, %392 : vector<2x16x16xi1>, vector<2x16x16xf32>
    %394 = vector.extract_strided_slice %350 {offsets = [0, 0, 1], sizes = [2, 16, 15], strides = [1, 1, 1]} : vector<2x16x16xf32> to vector<2x16x15xf32>
    %395 = vector.extract_strided_slice %350 {offsets = [0, 0, 0], sizes = [2, 16, 1], strides = [1, 1, 1]} : vector<2x16x16xf32> to vector<2x16x1xf32>
    %396 = tpu.concatenate %394, %395 in 2 : vector<2x16x15xf32>, vector<2x16x1xf32> -> vector<2x16x16xf32>
    %cst_110 = arith.constant 0.000000e+00 : f32
    %397 = vector.shape_cast %153 : vector<1x16x16xi1> to vector<1x16x16xi1>
    %398 = vector.broadcast %397 : vector<1x16x16xi1> to vector<2x16x16xi1>
    %399 = vector.broadcast %cst_110 : f32 to vector<2x16x16xf32>
    %400 = arith.select %398, %396, %399 : vector<2x16x16xi1>, vector<2x16x16xf32>
    %cst_111 = arith.constant 9.99999974E-6 : f32
    %401 = vector.broadcast %cst_111 : f32 to vector<2x16x16xf32>
    %402 = arith.subf %344, %401 : vector<2x16x16xf32>
    %403 = arith.cmpf oge, %382, %402 : vector<2x16x16xf32>
    %404 = arith.extui %403 : vector<2x16x16xi1> to vector<2x16x16xi32>
    %405 = arith.sitofp %404 : vector<2x16x16xi32> to vector<2x16x16xf32>
    %cst_112 = arith.constant 0.207105443 : f32
    %406 = vector.broadcast %cst_112 : f32 to vector<2x16x16xf32>
    %407 = arith.mulf %406, %361 : vector<2x16x16xf32>
    %cst_113 = arith.constant 0.50000453 : f32
    %408 = vector.broadcast %cst_113 : f32 to vector<2x16x16xf32>
    %409 = arith.mulf %408, %368 : vector<2x16x16xf32>
    %410 = arith.addf %407, %409 : vector<2x16x16xf32>
    %cst_114 = arith.constant 0.0857845545 : f32
    %411 = vector.broadcast %cst_114 : f32 to vector<2x16x16xf32>
    %412 = arith.mulf %411, %344 : vector<2x16x16xf32>
    %413 = arith.addf %410, %412 : vector<2x16x16xf32>
    %cst_115 = arith.constant 0.207105443 : f32
    %414 = vector.broadcast %cst_115 : f32 to vector<2x16x16xf32>
    %415 = arith.mulf %414, %382 : vector<2x16x16xf32>
    %416 = arith.addf %413, %415 : vector<2x16x16xf32>
    %417 = arith.cmpf oge, %416, %402 : vector<2x16x16xf32>
    %418 = arith.extui %417 : vector<2x16x16xi1> to vector<2x16x16xi32>
    %419 = arith.sitofp %418 : vector<2x16x16xi32> to vector<2x16x16xf32>
    %420 = arith.cmpf oge, %361, %402 : vector<2x16x16xf32>
    %421 = arith.extui %420 : vector<2x16x16xi1> to vector<2x16x16xi32>
    %422 = arith.sitofp %421 : vector<2x16x16xi32> to vector<2x16x16xf32>
    %cst_116 = arith.constant 0.50000453 : f32
    %423 = vector.broadcast %cst_116 : f32 to vector<2x16x16xf32>
    %424 = arith.mulf %423, %357 : vector<2x16x16xf32>
    %cst_117 = arith.constant 0.207105443 : f32
    %425 = vector.broadcast %cst_117 : f32 to vector<2x16x16xf32>
    %426 = arith.mulf %425, %361 : vector<2x16x16xf32>
    %427 = arith.addf %424, %426 : vector<2x16x16xf32>
    %cst_118 = arith.constant 0.207105443 : f32
    %428 = vector.broadcast %cst_118 : f32 to vector<2x16x16xf32>
    %429 = arith.mulf %428, %375 : vector<2x16x16xf32>
    %430 = arith.addf %427, %429 : vector<2x16x16xf32>
    %cst_119 = arith.constant 0.0857845545 : f32
    %431 = vector.broadcast %cst_119 : f32 to vector<2x16x16xf32>
    %432 = arith.mulf %431, %344 : vector<2x16x16xf32>
    %433 = arith.addf %430, %432 : vector<2x16x16xf32>
    %434 = arith.cmpf oge, %433, %402 : vector<2x16x16xf32>
    %435 = arith.extui %434 : vector<2x16x16xi1> to vector<2x16x16xi32>
    %436 = arith.sitofp %435 : vector<2x16x16xi32> to vector<2x16x16xf32>
    %437 = arith.cmpf oge, %375, %402 : vector<2x16x16xf32>
    %438 = arith.extui %437 : vector<2x16x16xi1> to vector<2x16x16xi32>
    %439 = arith.sitofp %438 : vector<2x16x16xi32> to vector<2x16x16xf32>
    %cst_120 = arith.constant 0.207105443 : f32
    %440 = vector.broadcast %cst_120 : f32 to vector<2x16x16xf32>
    %441 = arith.mulf %440, %375 : vector<2x16x16xf32>
    %cst_121 = arith.constant 0.0857845545 : f32
    %442 = vector.broadcast %cst_121 : f32 to vector<2x16x16xf32>
    %443 = arith.mulf %442, %344 : vector<2x16x16xf32>
    %444 = arith.addf %441, %443 : vector<2x16x16xf32>
    %cst_122 = arith.constant 0.50000453 : f32
    %445 = vector.broadcast %cst_122 : f32 to vector<2x16x16xf32>
    %446 = arith.mulf %445, %389 : vector<2x16x16xf32>
    %447 = arith.addf %444, %446 : vector<2x16x16xf32>
    %cst_123 = arith.constant 0.207105443 : f32
    %448 = vector.broadcast %cst_123 : f32 to vector<2x16x16xf32>
    %449 = arith.mulf %448, %393 : vector<2x16x16xf32>
    %450 = arith.addf %447, %449 : vector<2x16x16xf32>
    %451 = arith.cmpf oge, %450, %402 : vector<2x16x16xf32>
    %452 = arith.extui %451 : vector<2x16x16xi1> to vector<2x16x16xi32>
    %453 = arith.sitofp %452 : vector<2x16x16xi32> to vector<2x16x16xf32>
    %454 = arith.cmpf oge, %393, %402 : vector<2x16x16xf32>
    %455 = arith.extui %454 : vector<2x16x16xi1> to vector<2x16x16xi32>
    %456 = arith.sitofp %455 : vector<2x16x16xi32> to vector<2x16x16xf32>
    %cst_124 = arith.constant 0.0857845545 : f32
    %457 = vector.broadcast %cst_124 : f32 to vector<2x16x16xf32>
    %458 = arith.mulf %457, %344 : vector<2x16x16xf32>
    %cst_125 = arith.constant 0.207105443 : f32
    %459 = vector.broadcast %cst_125 : f32 to vector<2x16x16xf32>
    %460 = arith.mulf %459, %382 : vector<2x16x16xf32>
    %461 = arith.addf %458, %460 : vector<2x16x16xf32>
    %cst_126 = arith.constant 0.207105443 : f32
    %462 = vector.broadcast %cst_126 : f32 to vector<2x16x16xf32>
    %463 = arith.mulf %462, %393 : vector<2x16x16xf32>
    %464 = arith.addf %461, %463 : vector<2x16x16xf32>
    %cst_127 = arith.constant 0.50000453 : f32
    %465 = vector.broadcast %cst_127 : f32 to vector<2x16x16xf32>
    %466 = arith.mulf %465, %400 : vector<2x16x16xf32>
    %467 = arith.addf %464, %466 : vector<2x16x16xf32>
    %468 = arith.cmpf oge, %467, %402 : vector<2x16x16xf32>
    %469 = arith.extui %468 : vector<2x16x16xi1> to vector<2x16x16xi32>
    %470 = arith.sitofp %469 : vector<2x16x16xi32> to vector<2x16x16xf32>
    %cst_128 = arith.constant 0.000000e+00 : f32
    %471 = vector.broadcast %cst_128 : f32 to vector<2x16x16xf32>
    %472 = arith.subf %405, %419 : vector<2x16x16xf32>
    %473 = math.absf %472 : vector<2x16x16xf32>
    %474 = arith.addf %471, %473 : vector<2x16x16xf32>
    %475 = arith.subf %419, %422 : vector<2x16x16xf32>
    %476 = math.absf %475 : vector<2x16x16xf32>
    %477 = arith.addf %474, %476 : vector<2x16x16xf32>
    %478 = arith.subf %422, %436 : vector<2x16x16xf32>
    %479 = math.absf %478 : vector<2x16x16xf32>
    %480 = arith.addf %477, %479 : vector<2x16x16xf32>
    %481 = arith.subf %436, %439 : vector<2x16x16xf32>
    %482 = math.absf %481 : vector<2x16x16xf32>
    %483 = arith.addf %480, %482 : vector<2x16x16xf32>
    %484 = arith.subf %439, %453 : vector<2x16x16xf32>
    %485 = math.absf %484 : vector<2x16x16xf32>
    %486 = arith.addf %483, %485 : vector<2x16x16xf32>
    %487 = arith.subf %453, %456 : vector<2x16x16xf32>
    %488 = math.absf %487 : vector<2x16x16xf32>
    %489 = arith.addf %486, %488 : vector<2x16x16xf32>
    %490 = arith.subf %456, %470 : vector<2x16x16xf32>
    %491 = math.absf %490 : vector<2x16x16xf32>
    %492 = arith.addf %489, %491 : vector<2x16x16xf32>
    %493 = arith.addf %405, %419 : vector<2x16x16xf32>
    %494 = arith.addf %493, %422 : vector<2x16x16xf32>
    %495 = arith.addf %494, %436 : vector<2x16x16xf32>
    %496 = arith.addf %495, %439 : vector<2x16x16xf32>
    %497 = arith.addf %496, %453 : vector<2x16x16xf32>
    %498 = arith.addf %497, %456 : vector<2x16x16xf32>
    %499 = arith.addf %498, %470 : vector<2x16x16xf32>
    %cst_129 = arith.constant 2.000000e+00 : f32
    %500 = vector.broadcast %cst_129 : f32 to vector<2x16x16xf32>
    %501 = arith.cmpf ole, %492, %500 : vector<2x16x16xf32>
    %cst_130 = arith.constant 9.000000e+00 : f32
    %502 = vector.broadcast %cst_130 : f32 to vector<2x16x16xf32>
    %503 = arith.select %501, %499, %502 : vector<2x16x16xi1>, vector<2x16x16xf32>
    %cst_131 = arith.constant 5.000000e+00 : f32
    %504 = vector.broadcast %cst_131 : f32 to vector<2x16x16xf32>
    %505 = arith.cmpf olt, %503, %504 : vector<2x16x16xf32>
    %506 = arith.extui %505 : vector<2x16x16xi1> to vector<2x16x16xi32>
    %507 = arith.sitofp %506 : vector<2x16x16xi32> to vector<2x16x16xf32>
    %c0_132 = arith.constant 0 : index
    %c0_133 = arith.constant 0 : index
    %c0_134 = arith.constant 0 : index
    %508 = vector.load %arg4[%c0_132, %c0_133, %c0_134] : memref<2x16x16xf32, #tpu.memory_space<vmem>>, vector<2x16x16xf32>
    tpu.vector_store %arg4[%c0_132, %c0_133, %c0_134], %507 {strides = array<i32>} : memref<2x16x16xf32, #tpu.memory_space<vmem>>, vector<2x16x16xf32>,
    return
  }
  func.func @transform_0(%arg0: i32) -> (i32, i32, i32) {
    %c0_i32 = arith.constant 0 : i32
    %c0_i32_0 = arith.constant 0 : i32
    %c0_i32_1 = arith.constant 0 : i32
    return %arg0, %c0_i32, %c0_i32_0 : i32, i32, i32
  }
  func.func @transform_1(%arg0: i32) -> (i32, i32, i32) {
    %c0_i32 = arith.constant 0 : i32
    %c0_i32_0 = arith.constant 0 : i32
    %c0_i32_1 = arith.constant 0 : i32
    return %arg0, %c0_i32, %c0_i32_0 : i32, i32, i32
  }
  func.func @transform_2(%arg0: i32) -> (i32, i32, i32) {
    %c0_i32 = arith.constant 0 : i32
    %c0_i32_0 = arith.constant 0 : i32
    %c0_i32_1 = arith.constant 0 : i32
    return %arg0, %c0_i32, %c0_i32_0 : i32, i32, i32
  }
  func.func @transform_3(%arg0: i32) -> (i32, i32, i32) {
    %c0_i32 = arith.constant 0 : i32
    %c0_i32_0 = arith.constant 0 : i32
    %c0_i32_1 = arith.constant 0 : i32
    return %arg0, %c0_i32, %c0_i32_0 : i32, i32, i32
  }
}

</mosaic_0001>

<bundles_post_ra>
// kernel: tpu_custom_call.1
= control target key start
LH: loop header
LB: loop body
LE: loop exit
PB: predicated region body
PF: predicated region fallthrough
CT: control target
= control target key end

     0   :  { %9 = vsyncpa [#allocation3], 0  ;;  %s3300_s0 = inlined_call_operand.hbm [shape: f32[2,16,16], index: 0, kind: input, shape index: {}]   ;;  %s3301_s1 = inlined_call_operand.hbm [shape: f32[2,16,16], index: 1, kind: input, shape index: {}]   ;;  %s3302_s2 = inlined_call_operand.hbm [shape: f32[2,16,16], index: 2, kind: output, shape index: {0}]   ;;  %s3303_s3 = inlined_call_operand.hbm [shape: f32[2,16,16], index: 3, kind: output, shape index: {1}]  }
   0x1   :  { %10 = vsyncpa [#allocation6], 0 }
   0x2   :  { %11 = vsyncpa [#allocation4], 0 }
   0x3   :  { %12 = vsyncpa [#allocation9], 0  ;;  %s1852_s12 = smov [#allocation2]  }
   0x4   :  { %s18_s13 = sshll.u32 %s1852_s12, 4  ;;  %s19_s13 = int_to_ptr.vmem [resolvable:$true] %s18_s13 }
   0x5   :  { %s1772_s14 = scalar_lea.vmem %s19_s13, 512  ;;  %p1777_p1 = scmp.lt.s32.totalorder %s19_s13, %s19_s13 }
   0x6   :  { %p1773_p0 = scmp.ne.s32.totalorder %s19_s13, %s1772_s14  ;;  %p1778_p2 = scmp.lt.s32.totalorder %s1772_s14, %s1772_s14 }
   0x8   :  { %p1779_p3 = por %p1778_p2, %p1777_p1 }
   0xa   :  { %p1780_p4 = pnand %p1779_p3, %p1773_p0 }
   0xc   :  { %1783 = shalt.err (!%p1780_p4)
}
   0xd   :  { %s1853_s15 = smov 128   ;;  %s1854_s16 = smov 8  }
   0xe   :  { %24 = dma.hbm_to_vmem [thread:$0]  %s3300_s0, 512, %s19_s13, [#allocation3], %s1853_s15, %s1853_s15, %s1854_s16  }
   0xf   :  { %s1855_s19 = smov [#allocation5]  }
  0x10   :  { %s30_s20 = sshll.u32 %s1855_s19, 4  ;;  %s31_s20 = int_to_ptr.vmem [resolvable:$true] %s30_s20 }
  0x11   :  { %s1792_s21 = scalar_lea.vmem %s31_s20, 512  ;;  %p1797_p6 = scmp.lt.s32.totalorder %s31_s20, %s31_s20 }
  0x12   :  { %p1793_p5 = scmp.ne.s32.totalorder %s31_s20, %s1792_s21  ;;  %p1798_p7 = scmp.lt.s32.totalorder %s1792_s21, %s1792_s21 }
  0x14   :  { %p1799_p8 = por %p1798_p7, %p1797_p6 }
  0x16   :  { %p1800_p9 = pnand %p1799_p8, %p1793_p5 }
  0x18   :  { %1803 = shalt.err (!%p1800_p9)
}
  0x19   :  { %36 = dma.hbm_to_vmem [thread:$0]  %s3301_s1, 512, %s31_s20, [#allocation6], %s1853_s15, %s1853_s15, %s1854_s16  }
  0x1a   :  { %1844 = dma.done.wait [#allocation3], 512  }
  0x1b   :  { %1845 = vsyncadd [#allocation3], 4294966784 }
  0x1c   :  { %1846 = dma.done.wait [#allocation6], 512  }
  0x1d   :  { %1847 = vsyncadd [#allocation6], 4294966784  ;;  %vm3304_vm0 = vcmask 130048   ;;  %v1895_v0 = vld [vmem:[#allocation5 + $0x8] sm:$0xff]  ;;  %v1897_v1 = vld [vmem:[#allocation5] sm:$0xff]  ;;  %v43_v37 = vlaneseq  ;;  %v3313_v48 = vmov 0.0  }
  0x1e   :  { %v1899_v2 = vld [vmem:[#allocation5 + $0x10] sm:$0xff]  ;;  %v778_v3 = vsel %vm3304_vm0, %v1895_v0, 0.0  ;;  %v775_v4 = vsel %vm3304_vm0, %v1897_v1, 0.0  ;;  %v110_v5 = vld [vmem:[#allocation2] sm:$0xff]  ;;  %v111_v6 = vld [vmem:[#allocation2 + $0x8] sm:$0xff]  ;;  %vm187_vm5 = vcmask 1040384  }
  0x1f   :  { %779 = vadd.xlane.f32.xlu0 %v778_v3  ;;  %776 = vadd.xlane.f32.xlu1 %v775_v4  ;;  %v1405_v7 = vmul.f32 -1.442695, %v110_v5  ;;  %v1406_v8 = vmul.f32 -1.442695, %v111_v6  ;;  %v112_v9 = vld [vmem:[#allocation2 + $0x10] sm:$0xff]  ;;  %v781_v10 = vsel %vm3304_vm0, %v1899_v2, 0.0 }
  0x20   :  { %v1407_v11 = vmul.f32 -1.442695, %v112_v9  ;;  %v113_v12 = vld [vmem:[#allocation2 + $0x18] sm:$0xff]  ;;  %v44_v40 = vshrl.u32 %v43_v37, 7  ;;  %v1927_v44 = vand.u32 127, %v43_v37  ;;  %vm198_vm6 = vcmask 1046528  }
  0x21   :  { %1748 = vpow2.f32 %v1405_v7  ;;  %v1408_v13 = vmul.f32 -1.442695, %v113_v12  ;;  %v1921_v29 = vld [vmem:[#allocation5 + $0x18] sm:$0xff]  ;;  %s1857_s0 = smov 113   ;;  %s1858_s1 = smov 1  }
  0x22   :  { %1750 = vpow2.f32 %v1406_v8  ;;  %v784_v31 = vsel %vm3304_vm0, %v1921_v29, 0.0  ;;  %v45_v43 = vadd.s32 8, %v44_v40  ;;  %v1929_v45 = vadd.s32 4294967295, %v44_v40  ;;  %s1859_s24 = smov 127   ;;  %s1860_s25 = smov 15  }
  0x23   :  { %782 = vadd.xlane.f32.xlu0 %v781_v10  ;;  %1752 = vpow2.f32 %v1407_v11  ;;  %vm66_vm4 = vcmp.lt.s32.totalorder %v1927_v44, 16  ;;  %s1861_s26 = smov [#allocation7]  }
  0x24   :  { %1754 = vpow2.f32 %v1408_v13  ;;  %v1933_v47 = vadd.s32 1, %v45_v43  ;;  %vm50_vm3 = vcmp.ge.s32.totalorder %v1929_v45, 0  ;;  %s1376_s27 = sshll.u32 %s1861_s26, 4  ;;  %s1377_s27 = int_to_ptr.vmem [resolvable:$true] %s1376_s27 }
  0x25   :  { %vm1954_vm7 = vmand %vm50_vm3, %vm66_vm4  ;;  %s1804_s28 = scalar_lea.vmem %s1377_s27, 512  ;;  %p1809_p11 = scmp.lt.s32.totalorder %s1377_s27, %s1377_s27 }
  0x26   :  { %vm3305_vm8 = vcmp.lt.s32.totalorder %v1933_v47, 16  ;;  %p1805_p10 = scmp.ne.s32.totalorder %s1377_s27, %s1804_s28  ;;  %p1810_p12 = scmp.lt.s32.totalorder %s1804_s28, %s1804_s28 }
  0x27   :  { %vm1981_vm9 = vmand %vm3305_vm8, %vm66_vm4 }
  0x28   :  { %p1811_p13 = por %p1810_p12, %p1809_p11 }
  0x2a   :  { %p1812_p0 = pnand %p1811_p13, %p1805_p10 }
  0x2e   :  { %v1749_v14 = vpop.eup %1748 }
  0x2f   :  { %v1751_v15 = vpop.eup %1750  ;;  %v126_v16 = vadd.f32 1.0, %v1749_v14 }
  0x30   :  { %v1753_v17 = vpop.eup %1752  ;;  %v127_v18 = vadd.f32 1.0, %v1751_v15 }
  0x31   :  { %v1755_v19 = vpop.eup %1754  ;;  %1756 = vrcp.f32 %v126_v16  ;;  %v128_v20 = vadd.f32 1.0, %v1753_v17 }
  0x32   :  { %1758 = vrcp.f32 %v127_v18  ;;  %v129_v21 = vadd.f32 1.0, %v1755_v19 }
  0x33   :  { %1760 = vrcp.f32 %v128_v20 }
  0x34   :  { %1762 = vrcp.f32 %v129_v21 }
  0x3e   :  { %v1907_v22 = vpop.eup %1756 }
  0x3f   :  { %v1909_v23 = vpop.eup %1758  ;;  %v139_v24 = vsel %vm3304_vm0, %v1907_v22, 0.0 }
  0x40   :  { %v1913_v25 = vpop.eup %1760  ;;  %140 = vadd.xlane.f32.xlu0 %v139_v24  ;;  %v142_v27 = vsel %vm3304_vm0, %v1909_v23, 0.0 }
  0x41   :  { %v1915_v26 = vpop.eup %1762  ;;  %v145_v28 = vsel %vm3304_vm0, %v1913_v25, 0.0 }
  0x42   :  { %146 = vadd.xlane.f32.xlu1 %v145_v28  ;;  %v148_v30 = vsel %vm3304_vm0, %v1915_v26, 0.0 }
  0x44   :  { %143 = vadd.xlane.f32.xlu0 %v142_v27 }
  0x46   :  { %149 = vadd.xlane.f32.xlu1 %v148_v30 }
  0x48   :  { %785 = vadd.xlane.f32.xlu0 %v784_v31 }
  0xa8   :  { %v780_v32 = vpop.xlane.xlu0 %779  ;;  %v777_v33 = vpop.xlane.xlu1 %776 }
  0xa9   :  { %v787_v34 = vadd.f32 %v780_v32, %v777_v33 }
  0xab   :  { %v788_v35 = vrot.slane %v787_v34, 4 }
  0xac   :  { %v783_v3 = vpop.xlane.xlu0 %782 }
  0xad   :  { %v789_v36 = vadd.f32 %v788_v35, %v787_v34 }
  0xaf   :  { %v790_v38 = vrot.slane %v789_v36, 2 }
  0xb1   :  { %v791_v39 = vadd.f32 %v790_v38, %v789_v36 }
  0xb3   :  { %v792_v41 = vrot.slane %v791_v39, 1 }
  0xb5   :  { %v793_v42 = vadd.f32 %v792_v41, %v791_v39 }
  0xb7   :  { %v801_v46 = vmul.f32 0.00390625, %v793_v42 }
  0xb9   :  { %vm803_vm1 = vcmp.gt.f32.partialorder %v1897_v1, %v801_v46  ;;  %vm804_vm2 = vcmp.gt.f32.partialorder %v1895_v0, %v801_v46 }
  0xba   :  { %v1936_v49 = vsel %vm803_vm1, 1.0, %v3313_v48  ;;  %v1939_v50 = vsel %vm804_vm2, 1.0, %v3313_v48 }
  0xbb   :  { %v1508_v51 = vpack.i.bf16 %v1939_v50, %v1936_v49  ;;  %v817_v52 = vrot.slane %v1939_v50, 7  ;;  %v823_v53 = vrot.slane %v1936_v49, 7  ;;  %v833_v54 = vrot.slane %v1936_v49, 1 }
  0xbc   :  { %v834_v55 = vrot.slane %v1939_v50, 1  ;;  %v1960_v57 = vadd.f32 -1e-05, %v1936_v49  ;;  %v1963_v58 = vadd.f32 -1e-05, %v1939_v50 }
  0xbd   :  { %1509 = vrot.lane.b32.xlu0 %v1508_v51, %s1857_s0  ;;  %v824_v59 = vsel %vm187_vm5, %v823_v53, %v817_v52  ;;  %v831_v60 = vsel %vm187_vm5, %v817_v52, %v823_v53 }
  0xbe   :  { %3356 = vst [vmem:[#allocation14_spill] sm:$0xff] %v1960_v57  ;;  %v835_v61 = vsel %vm198_vm6, %v833_v54, %v834_v55  ;;  %v845_v62 = vsel %vm198_vm6, %v834_v55, %v833_v54  ;;  %v1971_v63 = vsel %vm1954_vm7, %v831_v60, 0.0  ;;  %v1975_v0 = vsel %vm66_vm4, %v824_v59, 0.0 }
  0xbf   :  { %vm1107_vm10 = vcmp.ge.f32.partialorder %v1971_v63, %v1960_v57  ;;  %vm1108_vm11 = vcmp.ge.f32.partialorder %v1975_v0, %v1963_v58  ;;  %v1992_v4 = vsel %vm66_vm4, %v835_v61, 0.0  ;;  %v1996_v5 = vsel %vm1981_vm9, %v845_v62, 0.0 }
  0xc0   :  { %vm1195_vm12 = vcmp.ge.f32.partialorder %v1992_v4, %v1960_v57  ;;  %vm1196_vm13 = vcmp.ge.f32.partialorder %v1996_v5, %v1963_v58  ;;  %v1548_v7 = vpack.i.bf16 %v824_v59, %v831_v60  ;;  %v2008_v33 = vpack.i.bf16 %v845_v62, %v835_v61 }
  0xc1   :  { %1519 = vrot.lane.b32.xlu0 %v1508_v51, %s1858_s1 }
  0xc5   :  { %1529 = vrot.lane.b32.xlu0 %v1508_v51, %s1859_s24 }
  0xc9   :  { %v141_v6 = vpop.xlane.xlu0 %140  ;;  %1539 = vrot.lane.b32.xlu0 %v1508_v51, %s1860_s25 }
  0xcb   :  { %v147_v8 = vpop.xlane.xlu1 %146 }
  0xcd   :  { %v144_v9 = vpop.xlane.xlu0 %143  ;;  %1549 = vrot.lane.b32.xlu0 %v1548_v7, %s1857_s0 }
  0xce   :  { %v151_v10 = vadd.f32 %v144_v9, %v141_v6 }
  0xcf   :  { %v150_v11 = vpop.xlane.xlu1 %149 }
  0xd0   :  { %v152_v12 = vrot.slane %v151_v10, 4  ;;  %v158_v13 = vadd.f32 %v150_v11, %v147_v8 }
  0xd1   :  { %v786_v14 = vpop.xlane.xlu0 %785  ;;  %1559 = vrot.lane.b32.xlu0 %v1548_v7, %s1859_s24 }
  0xd2   :  { %v153_v15 = vadd.f32 %v152_v12, %v151_v10  ;;  %v794_v16 = vadd.f32 %v786_v14, %v783_v3  ;;  %v159_v17 = vrot.slane %v158_v13, 4 }
  0xd4   :  { %v154_v18 = vrot.slane %v153_v15, 2  ;;  %v795_v19 = vrot.slane %v794_v16, 4  ;;  %v160_v20 = vadd.f32 %v159_v17, %v158_v13 }
  0xd5   :  { %1569 = vrot.lane.b32.xlu0 %v1548_v7, %s1860_s25 }
  0xd6   :  { %v155_v21 = vadd.f32 %v154_v18, %v153_v15  ;;  %v796_v24 = vadd.f32 %v795_v19, %v794_v16  ;;  %v161_v30 = vrot.slane %v160_v20, 2 }
  0xd8   :  { %v156_v27 = vrot.slane %v155_v21, 1  ;;  %v797_v28 = vrot.slane %v796_v24, 2  ;;  %v162_v36 = vadd.f32 %v161_v30, %v160_v20 }
  0xd9   :  { %1579 = vrot.lane.b32.xlu0 %v1548_v7, %s1858_s1 }
  0xda   :  { %v157_v31 = vadd.f32 %v156_v27, %v155_v21  ;;  %v798_v32 = vadd.f32 %v797_v28, %v796_v24  ;;  %v163_v39 = vrot.slane %v162_v36, 1 }
  0xdc   :  { %v799_v34 = vrot.slane %v798_v32, 1  ;;  %v165_v35 = vmul.f32 0.00390625, %v157_v31 }
  0xdd   :  { %1589 = vrot.lane.b32.xlu0 %v2008_v33, %s1857_s0 }
  0xde   :  { %v800_v37 = vadd.f32 %v799_v34, %v798_v32  ;;  %vm167_vm14 = vcmp.gt.f32.partialorder %v1907_v22, %v165_v35  ;;  %vm168_vm15 = vcmp.gt.f32.partialorder %v1909_v23, %v165_v35 }
  0xdf   :  { %v2025_v42 = vsel %vm167_vm14, 1.0, %v3313_v48  ;;  %v2028_v22 = vsel %vm168_vm15, 1.0, %v3313_v48 }
  0xe0   :  { %v802_v38 = vmul.f32 0.00390625, %v800_v37  ;;  %v181_v52 = vrot.slane %v2028_v22, 7  ;;  %v188_v53 = vrot.slane %v2025_v42, 7  ;;  %v199_v61 = vrot.slane %v2025_v42, 1 }
  0xe1   :  { %1599 = vrot.lane.b32.xlu0 %v2008_v33, %s1858_s1  ;;  %v200_v62 = vrot.slane %v2028_v22, 1  ;;  %v2070_v10 = vadd.f32 -1e-05, %v2025_v42  ;;  %v2073_v11 = vadd.f32 -1e-05, %v2028_v22 }
  0xe2   :  { %vm805_vm1 = vcmp.gt.f32.partialorder %v1899_v2, %v802_v38  ;;  %vm806_vm2 = vcmp.gt.f32.partialorder %v1921_v29, %v802_v38  ;;  %v164_v2 = vadd.f32 %v163_v39, %v162_v36  ;;  %v2037_v29 = vpack.i.bf16 %v2028_v22, %v2025_v42 }
  0xe3   :  { %v2019_v40 = vsel %vm805_vm1, 1.0, %v3313_v48  ;;  %v2022_v41 = vsel %vm806_vm2, 1.0, %v3313_v48  ;;  %v189_v3 = vsel %vm187_vm5, %v188_v53, %v181_v52  ;;  %v196_v6 = vsel %vm187_vm5, %v181_v52, %v188_v53 }
  0xe4   :  { %v1513_v23 = vpack.i.bf16 %v2022_v41, %v2019_v40  ;;  %v836_v43 = vrot.slane %v2019_v40, 1  ;;  %v837_v46 = vrot.slane %v2022_v41, 1  ;;  %v166_v51 = vmul.f32 0.00390625, %v164_v2 }
  0xe5   :  { %1609 = vrot.lane.b32.xlu0 %v2008_v33, %s1859_s24  ;;  %v818_v54 = vrot.slane %v2022_v41, 7  ;;  %v825_v55 = vrot.slane %v2019_v40, 7  ;;  %v2081_v13 = vadd.f32 -1e-05, %v2019_v40  ;;  %v2084_v14 = vadd.f32 -1e-05, %v2022_v41 }
  0xe6   :  { %1514 = vrot.lane.b32.xlu1 %v1513_v23, %s1857_s0  ;;  %v838_v59 = vsel %vm198_vm6, %v836_v43, %v837_v46  ;;  %v846_v60 = vsel %vm198_vm6, %v837_v46, %v836_v43  ;;  %vm169_vm14 = vcmp.gt.f32.partialorder %v1913_v25, %v166_v51  ;;  %vm170_vm15 = vcmp.gt.f32.partialorder %v1915_v26, %v166_v51 }
  0xe7   :  { %v832_v7 = vsel %vm187_vm5, %v818_v54, %v825_v55  ;;  %v2060_v8 = vpack.i.bf16 %v846_v60, %v838_v59  ;;  %v2063_v9 = vsel %vm169_vm14, 1.0, %v3313_v48  ;;  %v2066_v25 = vsel %vm170_vm15, 1.0, %v3313_v48  ;;  %3360 = vst [vmem:[#allocation16_spill] sm:$0xff] %v2081_v13  ;;  %3361 = vst [vmem:[#allocation17_spill] sm:$0xff] %v2084_v14 }
  0xe8   :  { %v826_v26 = vsel %vm187_vm5, %v825_v55, %v818_v54  ;;  %v2076_v12 = vadd.f32 -1e-05, %v2063_v9  ;;  %v1658_v15 = vpack.i.bf16 %v189_v3, %v196_v6  ;;  %v2089_v16 = vsel %vm1954_vm7, %v832_v7, 0.0 }
  0xe9   :  { %1619 = vrot.lane.b32.xlu0 %v2037_v29, %s1857_s0  ;;  %v1553_v17 = vpack.i.bf16 %v826_v26, %v832_v7  ;;  %v201_v18 = vsel %vm198_vm6, %v199_v61, %v200_v62  ;;  %v211_v19 = vsel %vm198_vm6, %v200_v62, %v199_v61  ;;  %v182_v20 = vrot.slane %v2066_v25, 7 }
  0xea   :  { %1524 = vrot.lane.b32.xlu1 %v1513_v23, %s1858_s1  ;;  %3359 = vst [vmem:[#allocation15_spill] sm:$0xff] %v2076_v12  ;;  %v190_v21 = vrot.slane %v2063_v9, 7  ;;  %vm1109_vm1 = vcmp.ge.f32.partialorder %v2089_v16, %v2081_v13  ;;  %v2099_v24 = vsel %vm66_vm4, %v826_v26, 0.0  ;;  %v2103_v27 = vsel %vm1954_vm7, %v196_v6, 0.0 }
  0xeb   :  { %v2106_v28 = vadd.f32 -1e-05, %v2066_v25  ;;  %vm1110_vm2 = vcmp.ge.f32.partialorder %v2099_v24, %v2084_v14  ;;  %v2113_v30 = vsel %vm66_vm4, %v189_v3, 0.0  ;;  %v202_v31 = vrot.slane %v2063_v9, 1 }
  0xec   :  { %v203_v32 = vrot.slane %v2066_v25, 1  ;;  %vm507_vm14 = vcmp.ge.f32.partialorder %v2103_v27, %v2070_v10  ;;  %v2124_v34 = vsel %vm66_vm4, %v201_v18, 0.0  ;;  %v2128_v35 = vsel %vm1981_vm9, %v211_v19, 0.0 }
  0xed   :  { %1629 = vrot.lane.b32.xlu0 %v2037_v29, %s1858_s1  ;;  %v2132_v36 = vsel %vm66_vm4, %v838_v59, 0.0  ;;  %v191_v37 = vsel %vm187_vm5, %v190_v21, %v182_v20  ;;  %v197_v38 = vsel %vm187_vm5, %v182_v20, %v190_v21  ;;  %vm595_vm0 = vcmp.ge.f32.partialorder %v2124_v34, %v2070_v10 }
  0xee   :  { %1534 = vrot.lane.b32.xlu1 %v1513_v23, %s1859_s24  ;;  %vm596_vm8 = vcmp.ge.f32.partialorder %v2128_v35, %v2073_v11  ;;  %v204_v39 = vsel %vm198_vm6, %v202_v31, %v203_v32  ;;  %v2148_v2 = vsel %vm1954_vm7, %v197_v38, 0.0  ;;  %v2152_v43 = vsel %vm66_vm4, %v191_v37, 0.0 }
  0xef   :  { %v2156_v46 = vsel %vm1981_vm9, %v846_v60, 0.0  ;;  %v2165_v56 = vsel %vm66_vm4, %v204_v39, 0.0  ;;  %v1698_v52 = vpack.i.bf16 %v211_v19, %v201_v18  ;;  %v1623_v1 = vpack.i.bf16 %v2066_v25, %v2063_v9 }
  0xf0   :  { %v1663_v53 = vpack.i.bf16 %v191_v37, %v197_v38  ;;  %v2202_v54 = vadd.s32 4294967295, %v1927_v44  ;;  %v2217_v3 = vadd.s32 1, %v1927_v44  ;;  %v2220_v6 = vmul.f32 0.085784554, %v1936_v49 }
  0xf1   :  { %1639 = vrot.lane.b32.xlu0 %v2037_v29, %s1859_s24  ;;  %vm284_vm5 = vcmask 121856  }
  0xf2   :  { %1544 = vrot.lane.b32.xlu1 %v1513_v23, %s1860_s25  ;;  %v212_v23 = vsel %vm198_vm6, %v203_v32, %v202_v31  ;;  %vm57_vm4 = vcmp.ge.s32.totalorder %v2202_v54, 0  ;;  %vm3306_vm6 = vcmask 7168  }
  0xf3   :  { %v2169_v51 = vsel %vm1981_vm9, %v212_v23, 0.0  ;;  %vm3307_vm9 = vcmp.lt.s32.totalorder %v2202_v54, 16  ;;  %v1703_v49 = vpack.i.bf16 %v212_v23, %v204_v39 }
  0xf4   :  { %vm2212_vm15 = vmand %vm57_vm4, %vm3307_vm9  ;;  %vm73_vm9 = vcmp.lt.s32.totalorder %v2217_v3, 16 }
  0xf5   :  { %1659 = vrot.lane.b32.xlu0 %v1658_v15, %s1857_s0 }
  0xf6   :  { %1554 = vrot.lane.b32.xlu1 %v1553_v17, %s1857_s0 }
  0xf9   :  { %1679 = vrot.lane.b32.xlu0 %v1658_v15, %s1859_s24 }
  0xfa   :  { %1564 = vrot.lane.b32.xlu1 %v1553_v17, %s1859_s24 }
  0xfd   :  { %1689 = vrot.lane.b32.xlu0 %v1658_v15, %s1860_s25 }
  0xfe   :  { %1574 = vrot.lane.b32.xlu1 %v1553_v17, %s1860_s25 }
 0x101   :  { %1699 = vrot.lane.b32.xlu0 %v1698_v52, %s1857_s0 }
 0x102   :  { %1584 = vrot.lane.b32.xlu1 %v1553_v17, %s1858_s1 }
 0x105   :  { %1709 = vrot.lane.b32.xlu0 %v1698_v52, %s1858_s1 }
 0x106   :  { %1594 = vrot.lane.b32.xlu1 %v2060_v8, %s1857_s0 }
 0x109   :  { %1719 = vrot.lane.b32.xlu0 %v1698_v52, %s1859_s24 }
 0x10a   :  { %1604 = vrot.lane.b32.xlu1 %v2060_v8, %s1858_s1 }
 0x10d   :  { %1729 = vrot.lane.b32.xlu0 %v1698_v52, %s1860_s25 }
 0x10e   :  { %1614 = vrot.lane.b32.xlu1 %v2060_v8, %s1859_s24 }
 0x111   :  { %1739 = vrot.lane.b32.xlu0 %v2008_v33, %s1860_s25 }
 0x112   :  { %1624 = vrot.lane.b32.xlu1 %v1623_v1, %s1857_s0 }
 0x116   :  { %1634 = vrot.lane.b32.xlu1 %v1623_v1, %s1858_s1 }
 0x11a   :  { %1644 = vrot.lane.b32.xlu1 %v1623_v1, %s1859_s24 }
 0x11e   :  { %1649 = vrot.lane.b32.xlu1 %v2037_v29, %s1860_s25 }
 0x122   :  { %1654 = vrot.lane.b32.xlu1 %v1623_v1, %s1860_s25  ;;  %v2260_v1 = vmul.f32 0.20710544, %v1971_v63  ;;  %v2298_v63 = vmul.f32 0.20710544, %v1992_v4 }
 0x126   :  { %1664 = vrot.lane.b32.xlu1 %v1663_v53, %s1857_s0 }
 0x12a   :  { %1669 = vrot.lane.b32.xlu1 %v1658_v15, %s1858_s1  ;;  %v2226_v15 = vmul.f32 0.085784554, %v1939_v50 }
 0x12e   :  { %1674 = vrot.lane.b32.xlu1 %v1663_v53, %s1858_s1 }
 0x12f   :  { %v1510_v33 = vpop.permute.xlu0 %1509 }
 0x130   :  { %v1512_v55 = vunpack.i.h.bf16 %v1510_v33  ;;  %v1511_v59 = vunpack.i.l.bf16 %v1510_v33 }
 0x132   :  { %1684 = vrot.lane.b32.xlu1 %v1663_v53, %s1859_s24 }
 0x133   :  { %v1520_v29 = vpop.permute.xlu0 %1519 }
 0x134   :  { %v1522_v61 = vunpack.i.h.bf16 %v1520_v29  ;;  %v1521_v62 = vunpack.i.l.bf16 %v1520_v29  ;;  %v2279_v29 = vsel %vm1107_vm10, 1.0, %v3313_v48  ;;  %vm3385_vm10 = vcmp.ge.f32.partialorder %v2113_v30, %v2073_v11 }
 0x136   :  { %v941_v7 = vsel %vm3306_vm6, %v1511_v59, %v1521_v62  ;;  %v942_v26 = vsel %vm3306_vm6, %v1512_v55, %v1522_v61  ;;  %1694 = vrot.lane.b32.xlu1 %v1663_v53, %s1860_s25  ;;  %v2263_v53 = vmul.f32 0.20710544, %v1975_v0 }
 0x137   :  { %v2230_v17 = vsel %vm2212_vm15, %v941_v7, 0.0  ;;  %v2234_v44 = vsel %vm2212_vm15, %v942_v26, 0.0  ;;  %v1530_v18 = vpop.permute.xlu0 %1529  ;;  %v2295_v7 = vsel %vm1108_vm11, 1.0, %v3313_v48  ;;  %v2301_v26 = vmul.f32 0.20710544, %v1996_v5 }
 0x138   :  { %v2237_v19 = vmul.f32 0.20710544, %v2230_v17  ;;  %v2240_v20 = vmul.f32 0.20710544, %v2234_v44  ;;  %v1532_v31 = vunpack.i.h.bf16 %v1530_v18  ;;  %v1531_v32 = vunpack.i.l.bf16 %v1530_v18 }
 0x139   :  { %v2307_v18 = vsel %vm1195_vm12, 1.0, %v3313_v48  ;;  %vm3393_vm12 = vcmp.ge.f32.partialorder %v2148_v2, %v2076_v12 }
 0x13a   :  { %v2248_v50 = vadd.f32 %v2237_v19, %v2220_v6  ;;  %v2252_v21 = vadd.f32 %v2240_v20, %v2226_v15  ;;  %1704 = vrot.lane.b32.xlu1 %v1703_v49, %s1857_s0 }
 0x13b   :  { %v1540_v37 = vpop.permute.xlu0 %1539 }
 0x13c   :  { %v1542_v38 = vunpack.i.h.bf16 %v1540_v37  ;;  %v1541_v39 = vunpack.i.l.bf16 %v1540_v37  ;;  %v2321_v37 = vsel %vm1196_vm13, 1.0, %v3313_v48  ;;  %vm3395_vm13 = vcmp.ge.f32.partialorder %v2152_v43, %v2106_v28 }
 0x13e   :  { %v973_v23 = vsel %vm284_vm5, %v1531_v32, %v1541_v39  ;;  %v974_v52 = vsel %vm284_vm5, %v1532_v31, %v1542_v38  ;;  %1714 = vrot.lane.b32.xlu1 %v1703_v49, %s1858_s1  ;;  %v2315_v32 = vmul.f32 0.085784554, %v2022_v41  ;;  %v2324_v38 = vmul.f32 0.085784554, %v2019_v40 }
 0x13f   :  { %v2267_v33 = vsel %vm73_vm9, %v973_v23, 0.0  ;;  %v2271_v55 = vsel %vm73_vm9, %v974_v52, 0.0  ;;  %v2273_v59 = vpop.permute.xlu0 %1549  ;;  %v2327_v39 = vmul.f32 0.085784554, %v2025_v42  ;;  %v2330_v23 = vmul.f32 0.085784554, %v2028_v22 }
 0x140   :  { %vm1055_vm6 = vcmp.ge.f32.partialorder %v2267_v33, %v1960_v57  ;;  %vm1056_vm7 = vcmp.ge.f32.partialorder %v2271_v55, %v1963_v58  ;;  %v2286_v61 = vmul.f32 0.20710544, %v2267_v33  ;;  %v2289_v62 = vmul.f32 0.20710544, %v2271_v55 }
 0x141   :  { %v2333_v52 = vmul.f32 0.20710544, %v2089_v16  ;;  %v2345_v40 = vsel %vm1109_vm1, 1.0, %v3313_v48  ;;  %v2348_v42 = vmul.f32 0.20710544, %v2099_v24  ;;  %v2354_v22 = vsel %vm1110_vm2, 1.0, %v3313_v48 }
 0x142   :  { %v1207_v31 = vadd.f32 %v2286_v61, %v2220_v6  ;;  %v1208_v0 = vadd.f32 %v2289_v62, %v2226_v15  ;;  %1724 = vrot.lane.b32.xlu1 %v1703_v49, %s1859_s24  ;;  %3366 = vst [vmem:[#allocation20_spill] sm:$0xff] %v2345_v40  ;;  %3367 = vst [vmem:[#allocation21_spill] sm:$0xff] %v2354_v22  ;;  %v2364_v16 = vmul.f32 0.20710544, %v2124_v34  ;;  %v2373_v24 = vsel %vm595_vm0, 1.0, %v3313_v48 }
 0x143   :  { %v1560_v4 = vpop.permute.xlu0 %1559  ;;  %3372 = vst [vmem:[#allocation26_spill] sm:$0xff] %v2373_v24  ;;  %v2382_v22 = vmul.f32 0.20710544, %v2132_v36  ;;  %vm2391_vm0 = vmand %vm50_vm3, %vm73_vm9  ;;  %v3376_v34 = vmov 0  ;;  %vm3399_vm1 = vcmask 7168  }
 0x144   :  { %v2336_v41 = vadd.f32 %v1207_v31, %v2298_v63  ;;  %v2339_v5 = vadd.f32 %v1208_v0, %v2301_v26  ;;  %v2357_v31 = vmul.f32 0.20710544, %v2103_v27  ;;  %v2361_v0 = vmul.f32 0.20710544, %v2113_v30  ;;  %3370 = vst [vmem:[#allocation24_spill] sm:$0xff] %v2364_v16  ;;  %vm3400_vm2 = vmmov %vm3399_vm1 }
 0x145   :  { %3374 = vst [vmem:[#allocation28_spill] sm:$0xff] %v2382_v22  ;;  %v2385_v16 = vmul.f32 0.20710544, %v2156_v46  ;;  %v1561_v40 = vunpack.i.l.bf16 %v1560_v4  ;;  %v3377_v34 = vsel %vm2391_vm0, 4294967295, %v3376_v34  ;;  %v2429_v27 = vmul.f32 0.20710544, %v2152_v43 }
 0x146   :  { %3364 = vst [vmem:[#allocation18_spill] sm:$0xff] %v2336_v41  ;;  %3365 = vst [vmem:[#allocation19_spill] sm:$0xff] %v2339_v5  ;;  %1734 = vrot.lane.b32.xlu1 %v1703_v49, %s1860_s25  ;;  %v2367_v41 = vmul.f32 0.20710544, %v2128_v35  ;;  %v2379_v49 = vsel %vm596_vm8, 1.0, %v3313_v48 }
 0x147   :  { %3368 = vst [vmem:[#allocation22_spill] sm:$0xff] %v2357_v31  ;;  %3369 = vst [vmem:[#allocation23_spill] sm:$0xff] %v2361_v0  ;;  %v1570_v5 = vpop.permute.xlu0 %1569  ;;  %v2458_v48 = vmul.f32 0.20710544, %v2165_v56 }
 0x148   :  { %3371 = vst [vmem:[#allocation25_spill] sm:$0xff] %v2367_v41  ;;  %3373 = vst [vmem:[#allocation27_spill] sm:$0xff] %v2379_v49  ;;  %v1562_v41 = vunpack.i.h.bf16 %v1560_v4  ;;  %v1572_v24 = vunpack.i.h.bf16 %v1570_v5  ;;  %v1571_v35 = vunpack.i.l.bf16 %v1570_v5  ;;  %v2404_v4 = vmul.f32 0.085784554, %v2063_v9 }
 0x149   :  { %3375 = vst [vmem:[#allocation29_spill] sm:$0xff] %v2385_v16  ;;  %3378 = vst [vmem:[#allocation30_spill] sm:$0xff] %v3377_v34  ;;  %v2407_v49 = vmul.f32 0.085784554, %v2066_v25  ;;  %v3383_v16 = vmov 0.0  }
 0x14a   :  { %vm2399_vm8 = vmand %vm50_vm3, %vm57_vm4  ;;  %3381 = vst [vmem:[#allocation31_spill] sm:$0xff] %v2404_v4  ;;  %v2413_v22 = vsel %vm507_vm14, 1.0, %v3383_v16  ;;  %v2419_v45 = vsel %vm3385_vm10, 1.0, %v3383_v16  ;;  %v909_v5 = vsel %vm284_vm5, %v1561_v40, %v1571_v35  ;;  %v910_v9 = vsel %vm284_vm5, %v1562_v41, %v1572_v24  ;;  %1744 = vrot.lane.b32.xlu1 %v2060_v8, %s1860_s25 }
 0x14b   :  { %3382 = vst [vmem:[#allocation32_spill] sm:$0xff] %v2407_v49  ;;  %3384 = vst [vmem:[#allocation33_spill] sm:$0xff] %v2413_v22  ;;  %v2426_v25 = vmul.f32 0.20710544, %v2148_v2  ;;  %v1552_v22 = vunpack.i.h.bf16 %v2273_v59  ;;  %v1551_v4 = vunpack.i.l.bf16 %v2273_v59  ;;  %v913_v30 = vsel %vm2391_vm0, %v909_v5, 0.0  ;;  %v1580_v41 = vpop.permute.xlu0 %1579 }
 0x14c   :  { %3386 = vst [vmem:[#allocation34_spill] sm:$0xff] %v2419_v45  ;;  %3388 = vst [vmem:[#allocation36_spill] sm:$0xff] %v2429_v27  ;;  %v914_v40 = vsel %vm73_vm9, %v910_v9, 0.0  ;;  %v1071_v24 = vmul.f32 0.50000453, %v913_v30  ;;  %vm3389_vm3 = vcmp.lt.s32.totalorder %v2202_v54, 16  ;;  %v1582_v27 = vunpack.i.h.bf16 %v1580_v41 }
 0x14d   :  { %3387 = vst [vmem:[#allocation35_spill] sm:$0xff] %v2426_v25  ;;  %v1072_v35 = vmul.f32 0.50000453, %v914_v40  ;;  %vm2441_vm11 = vmand %vm2399_vm8, %vm3389_vm3  ;;  %v3390_v8 = vmov 0  ;;  %v1581_v25 = vunpack.i.l.bf16 %v1580_v41  ;;  %v2449_v59 = vsel %vm3393_vm12, 1.0, %v3383_v16 }
 0x14e   :  { %v3391_v8 = vsel %vm2441_vm11, 4294967295, %v3390_v8  ;;  %3394 = vst [vmem:[#allocation38_spill] sm:$0xff] %v2449_v59  ;;  %v2455_v5 = vsel %vm3395_vm13, 1.0, %v3383_v16  ;;  %3397 = vst [vmem:[#allocation40_spill] sm:$0xff] %v2458_v48  ;;  %v2461_v9 = vmul.f32 0.20710544, %v2169_v51  ;;  %v1075_v30 = vadd.f32 %v1071_v24, %v2260_v1 }
 0x14f   :  { %3392 = vst [vmem:[#allocation37_spill] sm:$0xff] %v3391_v8  ;;  %3396 = vst [vmem:[#allocation39_spill] sm:$0xff] %v2455_v5  ;;  %v1076_v40 = vadd.f32 %v1072_v35, %v2263_v53  ;;  %v873_v2 = vsel %vm3399_vm1, %v1551_v4, %v1581_v25  ;;  %v874_v41 = vsel %vm3400_vm2, %v1552_v22, %v1582_v27  ;;  %v1590_v5 = vpop.permute.xlu0 %1589 }
 0x150   :  { %3398 = vst [vmem:[#allocation41_spill] sm:$0xff] %v2461_v9  ;;  %v877_v59 = vsel %vm2441_vm11, %v873_v2, 0.0  ;;  %v878_v43 = vsel %vm2212_vm15, %v874_v41, 0.0  ;;  %vm3401_vm14 = vcmp.ge.f32.partialorder %v2165_v56, %v2076_v12  ;;  %vm3403_vm8 = vcmp.ge.f32.partialorder %v2169_v51, %v2106_v28 }
 0x151   :  { %v2475_v9 = vsel %vm3401_vm14, 1.0, %v3383_v16  ;;  %v2481_v4 = vsel %vm3403_vm8, 1.0, %v3383_v16  ;;  %v1083_v22 = vadd.f32 %v2220_v6, %v1075_v30  ;;  %v1084_v25 = vadd.f32 %v2226_v15, %v1076_v40 }
 0x152   :  { %3402 = vst [vmem:[#allocation42_spill] sm:$0xff] %v2475_v9  ;;  %3404 = vst [vmem:[#allocation43_spill] sm:$0xff] %v2481_v4  ;;  %v1119_v27 = vmul.f32 0.50000453, %v877_v59  ;;  %v1120_v24 = vmul.f32 0.50000453, %v878_v43  ;;  %vm3405_vm10 = vcmp.ge.f32.partialorder %v2230_v17, %v1960_v57  ;;  %vm3406_vm3 = vcmp.ge.f32.partialorder %v2234_v44, %v1963_v58 }
 0x153   :  { %v2489_v35 = vsel %vm3405_vm10, 1.0, %v3383_v16  ;;  %v2495_v56 = vsel %vm3406_vm3, 1.0, %v3383_v16  ;;  %vm3407_vm12 = vcmp.ge.f32.partialorder %v2132_v36, %v2081_v13  ;;  %vm3409_vm13 = vcmp.ge.f32.partialorder %v2156_v46, %v2084_v14  ;;  %v1600_v43 = vpop.permute.xlu0 %1599 }
 0x154   :  { %v2501_v51 = vsel %vm3407_vm12, 1.0, %v3383_v16  ;;  %v2507_v59 = vsel %vm3409_vm13, 1.0, %v3383_v16  ;;  %v1091_v17 = vadd.f32 %v2286_v61, %v1083_v22  ;;  %v1092_v30 = vadd.f32 %v2289_v62, %v1084_v25 }
 0x155   :  { %3408 = vst [vmem:[#allocation44_spill] sm:$0xff] %v2501_v51  ;;  %3410 = vst [vmem:[#allocation45_spill] sm:$0xff] %v2507_v59  ;;  %v1123_v44 = vadd.f32 %v1119_v27, %v2260_v1  ;;  %v1124_v40 = vadd.f32 %v1120_v24, %v2263_v53  ;;  %v1461_v36 = vsel %vm1055_vm6, 1.0, %v3383_v16  ;;  %v1462_v46 = vsel %vm1056_vm7, 1.0, %v3383_v16 }
 0x156   :  { %v1592_v2 = vunpack.i.h.bf16 %v1590_v5  ;;  %v1591_v41 = vunpack.i.l.bf16 %v1590_v5  ;;  %vm1095_vm1 = vcmp.ge.f32.partialorder %v1091_v17, %v1960_v57  ;;  %vm1096_vm2 = vcmp.ge.f32.partialorder %v1092_v30, %v1963_v58 }
 0x157   :  { %v1131_v1 = vadd.f32 %v2237_v19, %v1123_v44  ;;  %v1132_v53 = vadd.f32 %v2240_v20, %v1124_v40  ;;  %v1465_v61 = vsel %vm1095_vm1, 1.0, %v3383_v16  ;;  %v1466_v33 = vsel %vm1096_vm2, 1.0, %v3383_v16  ;;  %v2535_v20 = vpop.permute.xlu0 %1609 }
 0x158   :  { %v1602_v62 = vunpack.i.h.bf16 %v1600_v43  ;;  %v1601_v22 = vunpack.i.l.bf16 %v1600_v43  ;;  %v1235_v25 = vsub.f32 %v1461_v36, %v1465_v61  ;;  %v1236_v55 = vsub.f32 %v1462_v46, %v1466_v33  ;;  %v1515_v4 = vpop.permute.xlu1 %1514 }
 0x159   :  { %v1247_v27 = vsub.f32 %v1465_v61, %v2279_v29  ;;  %v1248_v5 = vsub.f32 %v1466_v33, %v2295_v7  ;;  %v1319_v24 = vadd.f32 %v1465_v61, %v1461_v36  ;;  %v1320_v17 = vadd.f32 %v1466_v33, %v1462_v46 }
 0x15a   :  { %v1135_v30 = vadd.f32 %v1131_v1, %v2220_v6  ;;  %v1136_v19 = vadd.f32 %v1132_v53, %v2226_v15  ;;  %vm3411_vm6 = vcmp.lt.s32.totalorder %v1933_v47, 16  ;;  %v1239_v44 = vand.u32 2147483647, %v1235_v25 }
 0x15b   :  { %vm99_vm7 = vmand %vm3411_vm6, %vm57_vm4  ;;  %v1240_v40 = vand.u32 2147483647, %v1236_v55  ;;  %v1251_v43 = vand.u32 2147483647, %v1247_v27  ;;  %vm3412_vm14 = vcmask 7168   ;;  %v1323_v36 = vadd.f32 %v2279_v29, %v1319_v24  ;;  %v2553_v25 = vpop.permute.xlu0 %1619 }
 0x15c   :  { %v1007_v59 = vsel %vm3412_vm14, %v1591_v41, %v1601_v22  ;;  %v1252_v51 = vand.u32 2147483647, %v1248_v5  ;;  %v1324_v6 = vadd.f32 %v2295_v7, %v1320_v17  ;;  %vm1139_vm8 = vcmp.ge.f32.partialorder %v1135_v30, %v1960_v57  ;;  %vm3416_vm12 = vmmov %vm3412_vm14  ;;  %v1525_v24 = vpop.permute.xlu1 %1524 }
 0x15d   :  { %v1255_v15 = vadd.f32 %v1251_v43, %v1239_v44  ;;  %vm1140_vm10 = vcmp.ge.f32.partialorder %v1136_v19, %v1963_v58  ;;  %v1473_v46 = vsel %vm1139_vm8, 1.0, %v3383_v16  ;;  %vm3413_vm4 = vcmp.lt.s32.totalorder %v2202_v54, 16  ;;  %vm3421_vm13 = vmmov %vm3416_vm12 }
 0x15e   :  { %vm2545_vm3 = vmand %vm99_vm7, %vm3413_vm4  ;;  %v1008_v41 = vsel %vm3416_vm12, %v1592_v2, %v1602_v62  ;;  %v1256_v53 = vadd.f32 %v1252_v51, %v1240_v40  ;;  %v1474_v61 = vsel %vm1140_vm10, 1.0, %v3383_v16  ;;  %v1259_v33 = vsub.f32 %v2279_v29, %v1473_v46 }
 0x15f   :  { %v1271_v22 = vsub.f32 %v1473_v46, %v2489_v35  ;;  %v1260_v55 = vsub.f32 %v2295_v7, %v1474_v61  ;;  %v1272_v27 = vsub.f32 %v1474_v61, %v2495_v56  ;;  %v2557_v54 = vadd.f32 %v1473_v46, %v1323_v36  ;;  %vm3422_vm1 = vmmov %vm3416_vm12 }
 0x160   :  { %v2559_v5 = vadd.f32 %v1474_v61, %v1324_v6  ;;  %v1263_v17 = vand.u32 2147483647, %v1259_v33  ;;  %v1011_v51 = vsel %vm2212_vm15, %v1007_v59, 0.0  ;;  %v1012_v29 = vsel %vm2545_vm3, %v1008_v41, 0.0  ;;  %v1630_v6 = vpop.permute.xlu0 %1629  ;;  %v1535_v41 = vpop.permute.xlu1 %1534  ;;  %vm3428_vm8 = vmmov %vm3422_vm1 }
 0x161   :  { %v2561_v2 = vand.u32 2147483647, %v1271_v22  ;;  %v1264_v62 = vand.u32 2147483647, %v1260_v55  ;;  %v2567_v30 = vand.u32 2147483647, %v1272_v27  ;;  %v1517_v19 = vunpack.i.h.bf16 %v1515_v4  ;;  %vm3430_vm10 = vmmov %vm3422_vm1 }
 0x162   :  { %v1167_v7 = vmul.f32 0.50000453, %v1011_v51  ;;  %v2569_v44 = vadd.f32 %v1263_v17, %v1255_v15  ;;  %v1168_v40 = vmul.f32 0.50000453, %v1012_v29  ;;  %v1516_v43 = vunpack.i.l.bf16 %v1515_v4 }
 0x163   :  { %3417 = vst [vmem:[#allocation46_spill] sm:$0xff] %v2561_v2  ;;  %3418 = vst [vmem:[#allocation47_spill] sm:$0xff] %v2567_v30  ;;  %v2572_v46 = vadd.f32 %v1264_v62, %v1256_v53  ;;  %v1527_v33 = vunpack.i.h.bf16 %v1525_v24  ;;  %v1526_v55 = vunpack.i.l.bf16 %v1525_v24  ;;  %v1622_v27 = vunpack.i.h.bf16 %v2553_v25 }
 0x164   :  { %3419 = vst [vmem:[#allocation48_spill] sm:$0xff] %v2569_v44  ;;  %v1171_v61 = vadd.f32 %v1167_v7, %v2248_v50  ;;  %v1172_v22 = vadd.f32 %v1168_v40, %v2252_v21  ;;  %v1621_v15 = vunpack.i.l.bf16 %v2553_v25  ;;  %v1537_v51 = vunpack.i.h.bf16 %v1535_v41  ;;  %v2585_v21 = vpop.permute.xlu0 %1639  ;;  %v1545_v24 = vpop.permute.xlu1 %1544 }
 0x165   :  { %3420 = vst [vmem:[#allocation49_spill] sm:$0xff] %v2572_v46  ;;  %v944_v17 = vsel %vm3421_vm13, %v1517_v19, %v1527_v33  ;;  %v1536_v53 = vunpack.i.l.bf16 %v1535_v41  ;;  %v943_v50 = vsel %vm3422_vm1, %v1516_v43, %v1526_v55  ;;  %v1632_v7 = vunpack.i.h.bf16 %v1630_v6  ;;  %3423 = vst [vmem:[#allocation50_spill] sm:$0xff] %v2585_v21 }
 0x166   :  { %v1179_v4 = vadd.f32 %v2298_v63, %v1171_v61  ;;  %v1180_v29 = vadd.f32 %v2301_v26, %v1172_v22  ;;  %v948_v62 = vsel %vm2212_vm15, %v944_v17, 0.0  ;;  %v947_v25 = vsel %vm2212_vm15, %v943_v50, 0.0 }
 0x167   :  { %v2590_v63 = vmul.f32 0.20710544, %v948_v62  ;;  %vm1154_vm6 = vcmp.ge.f32.partialorder %v948_v62, %v2084_v14  ;;  %v2597_v19 = vmul.f32 0.20710544, %v947_v25  ;;  %vm1153_vm14 = vcmp.ge.f32.partialorder %v947_v25, %v2081_v13 }
 0x168   :  { %vm1183_vm2 = vcmp.ge.f32.partialorder %v1179_v4, %v1960_v57  ;;  %vm1184_vm7 = vcmp.ge.f32.partialorder %v1180_v29, %v1963_v58  ;;  %v2606_v61 = vsel %vm1153_vm14, 1.0, %v3383_v16  ;;  %v2609_v33 = vsel %vm1154_vm6, 1.0, %v3383_v16  ;;  %v2621_v17 = vpop.permute.xlu0 %1659  ;;  %v2626_v59 = vpop.permute.xlu1 %1554 }
 0x169   :  { %v2595_v26 = vsel %vm1183_vm2, 1.0, %v3383_v16  ;;  %v2601_v40 = vsel %vm1184_vm7, 1.0, %v3383_v16  ;;  %3424 = vst [vmem:[#allocation51_spill] sm:$0xff] %v2606_v61  ;;  %3425 = vst [vmem:[#allocation52_spill] sm:$0xff] %v2609_v33  ;;  %v2615_v22 = vadd.f32 %v2597_v19, %v2324_v38  ;;  %v2619_v55 = vadd.f32 %v2590_v63, %v2315_v32 }
 0x16a   :  { %v1283_v43 = vsub.f32 %v2489_v35, %v2595_v26  ;;  %v1284_v41 = vsub.f32 %v2495_v56, %v2601_v40  ;;  %v1631_v4 = vunpack.i.l.bf16 %v1630_v6  ;;  %3426 = vst [vmem:[#allocation53_spill] sm:$0xff] %v2621_v17  ;;  %v322_v50 = vsel %vm3428_vm8, %v1622_v27, %v1632_v7  ;;  %vm3435_vm2 = vmmov %vm3428_vm8 }
 0x16b   :  { %v1547_v62 = vunpack.i.h.bf16 %v1545_v24  ;;  %v1546_v25 = vunpack.i.l.bf16 %v1545_v24  ;;  %v330_v46 = vsel %vm2212_vm15, %v322_v50, 0.0  ;;  %vm3436_vm6 = vmmov %vm3435_vm2 }
 0x16c   :  { %v2623_v29 = vand.u32 2147483647, %v1283_v43  ;;  %v2628_v36 = vand.u32 2147483647, %v1284_v41  ;;  %v321_v30 = vsel %vm3430_vm10, %v1621_v15, %v1631_v4  ;;  %v2636_v43 = vmul.f32 0.20710544, %v330_v46  ;;  %v1680_v41 = vpop.permute.xlu0 %1679  ;;  %v1565_v50 = vpop.permute.xlu1 %1564  ;;  %vm3439_vm8 = vmmov %vm3435_vm2 }
 0x16d   :  { %v329_v6 = vsel %vm2212_vm15, %v321_v30, 0.0  ;;  %vm552_vm4 = vcmp.ge.f32.partialorder %v330_v46, %v2073_v11  ;;  %v975_v27 = vsel %vm284_vm5, %v1536_v53, %v1546_v25  ;;  %v976_v24 = vsel %vm284_vm5, %v1537_v51, %v1547_v62 }
 0x16e   :  { %3427 = vst [vmem:[#allocation54_spill] sm:$0xff] %v2623_v29  ;;  %3429 = vst [vmem:[#allocation55_spill] sm:$0xff] %v2628_v36  ;;  %v2640_v7 = vmul.f32 0.20710544, %v329_v6  ;;  %vm551_vm12 = vcmp.ge.f32.partialorder %v329_v6, %v2070_v10  ;;  %v2644_v15 = vsel %vm552_vm4, 1.0, %v3383_v16  ;;  %v2652_v30 = vadd.f32 %v2636_v43, %v2330_v23 }
 0x16f   :  { %3431 = vst [vmem:[#allocation56_spill] sm:$0xff] %v2636_v43  ;;  %v2648_v4 = vsel %vm551_vm12, 1.0, %v3383_v16  ;;  %v979_v46 = vsel %vm73_vm9, %v975_v27, 0.0  ;;  %v980_v53 = vsel %vm73_vm9, %v976_v24, 0.0  ;;  %v1557_v36 = vunpack.i.h.bf16 %v2626_v59  ;;  %vm3440_vm12 = vmmov %vm3435_vm2 }
 0x170   :  { %3432 = vst [vmem:[#allocation57_spill] sm:$0xff] %v2640_v7  ;;  %v2660_v25 = vadd.f32 %v2640_v7, %v2327_v39  ;;  %vm1057_vm13 = vcmp.ge.f32.partialorder %v979_v46, %v2081_v13  ;;  %vm1058_vm1 = vcmp.ge.f32.partialorder %v980_v53, %v2084_v14  ;;  %v1089_v51 = vmul.f32 0.20710544, %v979_v46  ;;  %v1690_v9 = vpop.permute.xlu0 %1689  ;;  %v3526_v3 = vld [vmem:[#allocation52_spill] sm:$0xff] }
 0x171   :  { %v2665_v62 = vsel %vm1057_vm13, 1.0, %v3383_v16  ;;  %v2668_v6 = vsel %vm1058_vm1, 1.0, %v3383_v16  ;;  %v1090_v27 = vmul.f32 0.20710544, %v980_v53  ;;  %v1556_v29 = vunpack.i.l.bf16 %v2626_v59  ;;  %v1575_v53 = vpop.permute.xlu1 %1574  ;;  %vm3445_vm13 = vmmov %vm3435_vm2 }
 0x172   :  { %v2672_v24 = vadd.f32 %v1089_v51, %v2324_v38  ;;  %v1567_v43 = vunpack.i.h.bf16 %v1565_v50  ;;  %v1566_v7 = vunpack.i.l.bf16 %v1565_v50  ;;  %v1682_v45 = vunpack.i.h.bf16 %v1680_v41  ;;  %vm3447_vm1 = vmmov %vm3435_vm2 }
 0x173   :  { %v2678_v46 = vadd.f32 %v1090_v27, %v2315_v32  ;;  %v1681_v2 = vunpack.i.l.bf16 %v1680_v41  ;;  %v1577_v21 = vunpack.i.h.bf16 %v1575_v53  ;;  %v1576_v49 = vunpack.i.l.bf16 %v1575_v53 }
 0x174   :  { %3433 = vst [vmem:[#allocation58_spill] sm:$0xff] %v2672_v24  ;;  %v1692_v24 = vunpack.i.h.bf16 %v1690_v9  ;;  %v1691_v57 = vunpack.i.l.bf16 %v1690_v9  ;;  %v2687_v48 = vpop.permute.xlu0 %1699  ;;  %v2691_v50 = vadd.f32 %v2489_v35, %v2557_v54  ;;  %v2695_v41 = vadd.f32 %v2495_v56, %v2559_v5 }
 0x175   :  { %3434 = vst [vmem:[#allocation59_spill] sm:$0xff] %v2678_v46  ;;  %v911_v12 = vsel %vm284_vm5, %v1566_v7, %v1576_v49  ;;  %v912_v46 = vsel %vm284_vm5, %v1567_v43, %v1577_v21  ;;  %v1585_v43 = vpop.permute.xlu1 %1584 }
 0x176   :  { %v915_v9 = vsel %vm2391_vm0, %v911_v12, 0.0  ;;  %v916_v53 = vsel %vm73_vm9, %v912_v46, 0.0  ;;  %v285_v49 = vsel %vm284_vm5, %v1681_v2, %v1691_v57  ;;  %v286_v21 = vsel %vm284_vm5, %v1682_v45, %v1692_v24 }
 0x177   :  { %v1073_v7 = vmul.f32 0.50000453, %v915_v9  ;;  %v1074_v44 = vmul.f32 0.50000453, %v916_v53  ;;  %v293_v35 = vsel %vm2391_vm0, %v285_v49, 0.0  ;;  %v294_v56 = vsel %vm73_vm9, %v286_v21, 0.0 }
 0x178   :  { %v471_v54 = vmul.f32 0.50000453, %v293_v35  ;;  %v472_v5 = vmul.f32 0.50000453, %v294_v56  ;;  %v1587_v59 = vunpack.i.h.bf16 %v1585_v43  ;;  %v1586_v12 = vunpack.i.l.bf16 %v1585_v43 }
 0x179   :  { %v1077_v17 = vadd.f32 %v1073_v7, %v2333_v52  ;;  %v1078_v46 = vadd.f32 %v1074_v44, %v2348_v42  ;;  %v1702_v57 = vunpack.i.h.bf16 %v2687_v48  ;;  %v1701_v45 = vunpack.i.l.bf16 %v2687_v48  ;;  %v2715_v49 = vpop.permute.xlu1 %1594  ;;  %v1710_v7 = vpop.permute.xlu0 %1709 }
 0x17a   :  { %v475_v2 = vadd.f32 %v471_v54, %v2357_v31  ;;  %v476_v24 = vadd.f32 %v472_v5, %v2361_v0  ;;  %v875_v9 = vsel %vm3435_vm2, %v1556_v29, %v1586_v12  ;;  %v876_v53 = vsel %vm3436_vm6, %v1557_v36, %v1587_v59 }
 0x17b   :  { %v1085_v21 = vadd.f32 %v2324_v38, %v1077_v17  ;;  %v1086_v43 = vadd.f32 %v2315_v32, %v1078_v46  ;;  %v879_v44 = vsel %vm2441_vm11, %v875_v9, 0.0  ;;  %v880_v48 = vsel %vm2212_vm15, %v876_v53, 0.0 }
 0x17c   :  { %v2724_v35 = vadd.f32 %v2327_v39, %v475_v2  ;;  %v2727_v29 = vadd.f32 %v2330_v23, %v476_v24  ;;  %v1121_v36 = vmul.f32 0.50000453, %v879_v44  ;;  %v1122_v59 = vmul.f32 0.50000453, %v880_v48  ;;  %v3438_v48 = vld [vmem:[#allocation21_spill] sm:$0xff] }
 0x17d   :  { %v1093_v56 = vadd.f32 %v1089_v51, %v1085_v21  ;;  %v1094_v54 = vadd.f32 %v1090_v27, %v1086_v43  ;;  %v1597_v17 = vunpack.i.h.bf16 %v2715_v49  ;;  %v1596_v5 = vunpack.i.l.bf16 %v2715_v49  ;;  %v1605_v34 = vpop.permute.xlu1 %1604  ;;  %v3437_v43 = vld [vmem:[#allocation20_spill] sm:$0xff] }
 0x17e   :  { %v1125_v12 = vadd.f32 %v1121_v36, %v2333_v52  ;;  %v1126_v46 = vadd.f32 %v1122_v59, %v2348_v42  ;;  %v1712_v9 = vunpack.i.h.bf16 %v1710_v7  ;;  %v1711_v53 = vunpack.i.l.bf16 %v1710_v7 }
 0x17f   :  { %vm1097_vm7 = vcmp.ge.f32.partialorder %v1093_v56, %v2081_v13  ;;  %vm1098_vm14 = vcmp.ge.f32.partialorder %v1094_v54, %v2084_v14  ;;  %v1607_v2 = vunpack.i.h.bf16 %v1605_v34  ;;  %v1606_v24 = vunpack.i.l.bf16 %v1605_v34 }
 0x180   :  { %v1467_v51 = vsel %vm1097_vm7, 1.0, %v3383_v16  ;;  %v1468_v27 = vsel %vm1098_vm14, 1.0, %v3383_v16  ;;  %v1133_v21 = vadd.f32 %v2597_v19, %v1125_v12  ;;  %v1134_v49 = vadd.f32 %v2590_v63, %v1126_v46 }
 0x181   :  { %v1237_v52 = vsub.f32 %v2665_v62, %v1467_v51  ;;  %v1238_v42 = vsub.f32 %v2668_v6, %v1468_v27  ;;  %v1249_v44 = vsub.f32 %v1467_v51, %v3437_v43  ;;  %v1250_v7 = vsub.f32 %v1468_v27, %v3438_v48  ;;  %v2747_v54 = vpop.permute.xlu1 %1614 }
 0x182   :  { %v1321_v36 = vadd.f32 %v1467_v51, %v2665_v62  ;;  %v1322_v34 = vadd.f32 %v1468_v27, %v2668_v6  ;;  %v1137_v59 = vadd.f32 %v1133_v21, %v2324_v38  ;;  %v1138_v56 = vadd.f32 %v1134_v49, %v2315_v32  ;;  %v2756_v6 = vpop.permute.xlu0 %1719 }
 0x183   :  { %v1241_v19 = vand.u32 2147483647, %v1237_v52  ;;  %v1242_v63 = vand.u32 2147483647, %v1238_v42  ;;  %v1253_v12 = vand.u32 2147483647, %v1249_v44  ;;  %v395_v46 = vsel %vm3439_vm8, %v1701_v45, %v1711_v53 }
 0x184   :  { %v1254_v0 = vand.u32 2147483647, %v1250_v7  ;;  %v1325_v31 = vadd.f32 %v3437_v43, %v1321_v36  ;;  %v1326_v8 = vadd.f32 %v3438_v48, %v1322_v34  ;;  %vm1141_vm10 = vcmp.ge.f32.partialorder %v1137_v59, %v2081_v13 }
 0x185   :  { %v1257_v62 = vadd.f32 %v1253_v12, %v1241_v19  ;;  %vm1142_vm4 = vcmp.ge.f32.partialorder %v1138_v56, %v2084_v14  ;;  %v1475_v38 = vsel %vm1141_vm10, 1.0, %v3383_v16  ;;  %v396_v32 = vsel %vm3440_vm12, %v1702_v57, %v1712_v9  ;;  %v2761_v21 = vpop.permute.xlu1 %1624  ;;  %vm3475_vm12 = vmmov %vm3447_vm1 }
 0x186   :  { %v1258_v51 = vadd.f32 %v1254_v0, %v1242_v63  ;;  %v1476_v27 = vsel %vm1142_vm4, 1.0, %v3383_v16  ;;  %v1261_v45 = vsub.f32 %v3437_v43, %v1475_v38  ;;  %v1273_v53 = vsub.f32 %v1475_v38, %v2606_v61  ;;  %vm3473_vm4 = vmmov %vm3447_vm1 }
 0x187   :  { %v1262_v49 = vsub.f32 %v3438_v48, %v1476_v27  ;;  %v1274_v52 = vsub.f32 %v1476_v27, %v2609_v33  ;;  %v2765_v42 = vadd.f32 %v1475_v38, %v1325_v31  ;;  %v2767_v44 = vadd.f32 %v1476_v27, %v1326_v8 }
 0x188   :  { %v1265_v57 = vand.u32 2147483647, %v1261_v45  ;;  %v2769_v9 = vand.u32 2147483647, %v1273_v53  ;;  %v403_v0 = vsel %vm2212_vm15, %v395_v46, 0.0  ;;  %v404_v43 = vsel %vm2545_vm3, %v396_v32, 0.0  ;;  %v1730_v32 = vpop.permute.xlu0 %1729 }
 0x189   :  { %3441 = vst [vmem:[#allocation20_spill] sm:$0xff] %v2765_v42  ;;  %3442 = vst [vmem:[#allocation21_spill] sm:$0xff] %v2767_v44  ;;  %v1266_v7 = vand.u32 2147483647, %v1262_v49  ;;  %v2775_v36 = vand.u32 2147483647, %v1274_v52  ;;  %v1009_v48 = vsel %vm3445_vm13, %v1596_v5, %v1606_v24  ;;  %v1010_v8 = vsel %vm3447_vm1, %v1597_v17, %v1607_v2  ;;  %v2783_v19 = vpop.permute.xlu1 %1634 }
 0x18a   :  { %3443 = vst [vmem:[#allocation60_spill] sm:$0xff] %v2769_v9  ;;  %v567_v34 = vmul.f32 0.50000453, %v403_v0  ;;  %v2778_v59 = vadd.f32 %v1265_v57, %v1257_v62  ;;  %v568_v31 = vmul.f32 0.50000453, %v404_v43  ;;  %v1013_v56 = vsel %vm2212_vm15, %v1009_v48, 0.0 }
 0x18b   :  { %3444 = vst [vmem:[#allocation61_spill] sm:$0xff] %v2775_v36  ;;  %v2785_v63 = vadd.f32 %v1266_v7, %v1258_v51  ;;  %v1014_v46 = vsel %vm2545_vm3, %v1010_v8, 0.0  ;;  %v1169_v38 = vmul.f32 0.50000453, %v1013_v56  ;;  %v1722_v62 = vunpack.i.h.bf16 %v2756_v6  ;;  %v3449_v2 = vld [vmem:[#allocation24_spill] sm:$0xff]  ;;  %v3450_v53 = vld [vmem:[#allocation25_spill] sm:$0xff] }
 0x18c   :  { %3446 = vst [vmem:[#allocation62_spill] sm:$0xff] %v2778_v59  ;;  %v571_v12 = vadd.f32 %v567_v34, %v2660_v25  ;;  %v572_v5 = vadd.f32 %v568_v31, %v2652_v30  ;;  %v1170_v24 = vmul.f32 0.50000453, %v1014_v46  ;;  %v1721_v17 = vunpack.i.l.bf16 %v2756_v6  ;;  %v3451_v43 = vld [vmem:[#allocation28_spill] sm:$0xff]  ;;  %v3453_v48 = vld [vmem:[#allocation29_spill] sm:$0xff]  ;;  %v3502_v44 = vld [vmem:[#allocation23_spill] sm:$0xff] }
 0x18d   :  { %3448 = vst [vmem:[#allocation63_spill] sm:$0xff] %v2785_v63  ;;  %v1173_v45 = vadd.f32 %v1169_v38, %v2615_v22  ;;  %v1732_v57 = vunpack.i.h.bf16 %v1730_v32  ;;  %v1731_v0 = vunpack.i.l.bf16 %v1730_v32  ;;  %v2799_v30 = vpop.permute.xlu1 %1644  ;;  %v1627_v7 = vunpack.i.h.bf16 %v2761_v21  ;;  %v3456_v38 = vld [vmem:[#allocation27_spill] sm:$0xff] }
 0x18e   :  { %v579_v27 = vadd.f32 %v3449_v2, %v571_v12  ;;  %v580_v49 = vadd.f32 %v3450_v53, %v572_v5  ;;  %v1174_v52 = vadd.f32 %v1170_v24, %v2619_v55  ;;  %v1626_v22 = vunpack.i.l.bf16 %v2761_v21  ;;  %v3455_v12 = vld [vmem:[#allocation26_spill] sm:$0xff] }
 0x18f   :  { %v1181_v6 = vadd.f32 %v3451_v43, %v1173_v45  ;;  %v439_v55 = vsel %vm284_vm5, %v1721_v17, %v1731_v0  ;;  %vm3457_vm8 = vcmp.lt.s32.totalorder %v1933_v47, 16  ;;  %v1740_v17 = vpop.permute.xlu0 %1739  ;;  %v440_v25 = vsel %vm284_vm5, %v1722_v62, %v1732_v57 }
 0x190   :  { %vm583_vm2 = vcmp.ge.f32.partialorder %v579_v27, %v2070_v10  ;;  %vm584_vm6 = vcmp.ge.f32.partialorder %v580_v49, %v2073_v11  ;;  %v1182_v31 = vadd.f32 %v3453_v48, %v1174_v52  ;;  %vm2831_vm10 = vmand %vm3457_vm8, %vm73_vm9  ;;  %v1742_v36 = vunpack.i.h.bf16 %v1740_v17 }
 0x191   :  { %v2807_v34 = vsel %vm583_vm2, 1.0, %v3383_v16  ;;  %v2812_v8 = vsel %vm584_vm6, 1.0, %v3383_v16  ;;  %vm1185_vm7 = vcmp.ge.f32.partialorder %v1181_v6, %v2081_v13  ;;  %v2835_v27 = vpop.permute.xlu1 %1649  ;;  %v1741_v9 = vunpack.i.l.bf16 %v1740_v17 }
 0x192   :  { %3452 = vst [vmem:[#allocation24_spill] sm:$0xff] %v2807_v34  ;;  %3454 = vst [vmem:[#allocation25_spill] sm:$0xff] %v2812_v8  ;;  %v683_v56 = vsub.f32 %v2648_v4, %v2807_v34  ;;  %v695_v46 = vsub.f32 %v2807_v34, %v3455_v12  ;;  %v684_v21 = vsub.f32 %v2644_v15, %v2812_v8  ;;  %v2825_v5 = vsel %vm1185_vm7, 1.0, %v3383_v16 }
 0x193   :  { %v696_v32 = vsub.f32 %v2812_v8, %v3456_v38  ;;  %vm1186_vm14 = vcmp.ge.f32.partialorder %v1182_v31, %v2084_v14  ;;  %v1285_v0 = vsub.f32 %v2606_v61, %v2825_v5  ;;  %v3467_v8 = vunpack.i.h.bf16 %v2535_v20 }
 0x194   :  { %v2837_v45 = vand.u32 2147483647, %v683_v56  ;;  %v2839_v49 = vand.u32 2147483647, %v695_v46  ;;  %v2842_v52 = vsel %vm1186_vm14, 1.0, %v3383_v16  ;;  %v447_v56 = vsel %vm73_vm9, %v439_v55, 0.0 }
 0x195   :  { %3462 = vst [vmem:[#allocation64_spill] sm:$0xff] %v2842_v52  ;;  %v2846_v6 = vand.u32 2147483647, %v684_v21  ;;  %v2848_v47 = vand.u32 2147483647, %v696_v32  ;;  %v1286_v31 = vsub.f32 %v2609_v33, %v2842_v52  ;;  %v448_v46 = vsel %vm2831_vm10, %v440_v25, 0.0  ;;  %v1655_v59 = vpop.permute.xlu1 %1654 }
 0x196   :  { %3460 = vst [vmem:[#allocation28_spill] sm:$0xff] %v2837_v45  ;;  %3461 = vst [vmem:[#allocation29_spill] sm:$0xff] %v2839_v49  ;;  %v2853_v51 = vand.u32 2147483647, %v1285_v0  ;;  %v2861_v21 = vmul.f32 0.50000453, %v447_v56  ;;  %v1044_v62 = vsel %vm284_vm5, %v3467_v8, %v1742_v36  ;;  %v3468_v57 = vsub.f32 %v2595_v26, %v2307_v18 }
 0x197   :  { %3463 = vst [vmem:[#allocation65_spill] sm:$0xff] %v2846_v6  ;;  %3464 = vst [vmem:[#allocation66_spill] sm:$0xff] %v2848_v47  ;;  %v2859_v63 = vand.u32 2147483647, %v1286_v31  ;;  %v2863_v32 = vmul.f32 0.50000453, %v448_v46  ;;  %v3470_v25 = vsub.f32 %v2601_v40, %v2321_v37  ;;  %v1335_v31 = vadd.f32 %v2595_v26, %v2691_v50 }
 0x198   :  { %3465 = vst [vmem:[#allocation67_spill] sm:$0xff] %v2853_v51  ;;  %v2871_v55 = vand.u32 2147483647, %v3468_v57  ;;  %v3472_v17 = vunpack.i.l.bf16 %v2535_v20  ;;  %v1048_v36 = vsel %vm2831_vm10, %v1044_v62, 0.0  ;;  %v1336_v8 = vadd.f32 %v2601_v40, %v2695_v41  ;;  %v3474_v40 = vld [vmem:[#allocation19_spill] sm:$0xff]  ;;  %v3501_v33 = vld [vmem:[#allocation22_spill] sm:$0xff] }
 0x199   :  { %3466 = vst [vmem:[#allocation68_spill] sm:$0xff] %v2859_v63  ;;  %v2876_v0 = vand.u32 2147483647, %v3470_v25  ;;  %v1637_v46 = vunpack.i.h.bf16 %v2783_v19  ;;  %v1216_v25 = vmul.f32 0.50000453, %v1048_v36  ;;  %v1636_v26 = vunpack.i.l.bf16 %v2783_v19  ;;  %v3476_v36 = vld [vmem:[#allocation18_spill] sm:$0xff] }
 0x19a   :  { %3469 = vst [vmem:[#allocation69_spill] sm:$0xff] %v2871_v55  ;;  %v1043_v56 = vsel %vm284_vm5, %v3472_v17, %v1741_v9  ;;  %v1340_v20 = vadd.f32 %v2321_v37, %v1336_v8  ;;  %v1647_v62 = vunpack.i.h.bf16 %v2799_v30  ;;  %v2895_v17 = vpop.permute.xlu1 %1664  ;;  %v1651_v63 = vunpack.i.l.bf16 %v2835_v27 }
 0x19b   :  { %3471 = vst [vmem:[#allocation70_spill] sm:$0xff] %v2876_v0  ;;  %v1047_v57 = vsel %vm73_vm9, %v1043_v56, 0.0  ;;  %v1339_v0 = vadd.f32 %v2307_v18, %v1335_v31  ;;  %v324_v9 = vsel %vm3473_vm4, %v1627_v7, %v1637_v46  ;;  %v1220_v41 = vadd.f32 %v1216_v25, %v3474_v40  ;;  %v3477_v46 = vld [vmem:[#allocation15_spill] sm:$0xff]  ;;  %v3478_v25 = vld [vmem:[#allocation14_spill] sm:$0xff] }
 0x19c   :  { %v1215_v50 = vmul.f32 0.50000453, %v1047_v57  ;;  %v323_v55 = vsel %vm3475_vm12, %v1626_v22, %v1636_v26  ;;  %v332_v56 = vsel %vm2212_vm15, %v324_v9, 0.0  ;;  %v1646_v31 = vunpack.i.l.bf16 %v2799_v30 }
 0x19d   :  { %v331_v8 = vsel %vm2212_vm15, %v323_v55, 0.0  ;;  %v2905_v57 = vmul.f32 0.20710544, %v332_v56  ;;  %vm554_vm13 = vcmp.ge.f32.partialorder %v332_v56, %v2106_v28  ;;  %vm1224_vm1 = vcmp.ge.f32.partialorder %v1220_v41, %v1963_v58  ;;  %v3479_v55 = vld [vmem:[#allocation32_spill] sm:$0xff]  ;;  %v3481_v56 = vld [vmem:[#allocation31_spill] sm:$0xff] }
 0x19e   :  { %v1219_v19 = vadd.f32 %v1215_v50, %v3476_v36  ;;  %v2909_v7 = vmul.f32 0.20710544, %v331_v8  ;;  %vm553_vm2 = vcmp.ge.f32.partialorder %v331_v8, %v3477_v46  ;;  %v2913_v22 = vsel %vm554_vm13, 1.0, %v3383_v16  ;;  %v2924_v9 = vpop.permute.xlu1 %1669 }
 0x19f   :  { %v1490_v30 = vsel %vm1224_vm1, 1.0, %v3383_v16  ;;  %v2918_v26 = vsel %vm553_vm2, 1.0, %v3383_v16  ;;  %v2922_v50 = vadd.f32 %v2905_v57, %v3479_v55  ;;  %v1657_v34 = vunpack.i.h.bf16 %v1655_v59 }
 0x1a0   :  { %vm1223_vm6 = vcmp.ge.f32.partialorder %v1219_v19, %v3478_v25  ;;  %v1308_v40 = vsub.f32 %v2321_v37, %v1490_v30  ;;  %v2928_v41 = vadd.f32 %v1490_v30, %v1340_v20  ;;  %v2932_v36 = vadd.f32 %v2909_v7, %v3481_v56  ;;  %v3485_v30 = vld [vmem:[#allocation50_spill] sm:$0xff] }
 0x1a1   :  { %v1489_v58 = vsel %vm1223_vm6, 1.0, %v3383_v16  ;;  %v1652_v25 = vunpack.i.h.bf16 %v2835_v27  ;;  %v1656_v47 = vunpack.i.l.bf16 %v1655_v59  ;;  %vm3494_vm1 = vcmask 7168  }
 0x1a2   :  { %3480 = vst [vmem:[#allocation19_spill] sm:$0xff] %v2928_v41  ;;  %v1307_v19 = vsub.f32 %v2307_v18, %v1489_v58  ;;  %v2935_v8 = vadd.f32 %v1489_v58, %v1339_v0  ;;  %v2939_v51 = vand.u32 2147483647, %v1308_v40  ;;  %v3486_v41 = vunpack.i.l.bf16 %v3485_v30  ;;  %vm3496_vm2 = vmmov %vm3494_vm1 }
 0x1a3   :  { %v3487_v18 = vunpack.i.h.bf16 %v3485_v30  ;;  %v1666_v58 = vunpack.i.l.bf16 %v2895_v17  ;;  %v359_v40 = vsel %vm284_vm5, %v1646_v31, %v1656_v47  ;;  %vm3497_vm6 = vmmov %vm3494_vm1 }
 0x1a4   :  { %3482 = vst [vmem:[#allocation18_spill] sm:$0xff] %v2935_v8  ;;  %3483 = vst [vmem:[#allocation15_spill] sm:$0xff] %v2939_v51  ;;  %v2942_v20 = vand.u32 2147483647, %v1307_v19  ;;  %v357_v49 = vsel %vm284_vm5, %v3486_v41, %v1651_v63  ;;  %v1675_v8 = vpop.permute.xlu1 %1674  ;;  %v360_v19 = vsel %vm284_vm5, %v1647_v62, %v1657_v34 }
 0x1a5   :  { %v358_v0 = vsel %vm284_vm5, %v3487_v18, %v1652_v25  ;;  %v365_v27 = vsel %vm73_vm9, %v357_v49, 0.0  ;;  %v367_v49 = vsel %vm73_vm9, %v359_v40, 0.0  ;;  %v368_v18 = vsel %vm73_vm9, %v360_v19, 0.0 }
 0x1a6   :  { %3484 = vst [vmem:[#allocation14_spill] sm:$0xff] %v2942_v20  ;;  %v366_v59 = vsel %vm73_vm9, %v358_v0, 0.0  ;;  %vm455_vm7 = vcmp.ge.f32.partialorder %v365_v27, %v2070_v10  ;;  %v487_v63 = vmul.f32 0.20710544, %v365_v27  ;;  %vm457_vm8 = vcmp.ge.f32.partialorder %v367_v49, %v3477_v46 }
 0x1a7   :  { %vm456_vm14 = vcmp.ge.f32.partialorder %v366_v59, %v2073_v11  ;;  %v488_v41 = vmul.f32 0.20710544, %v366_v59  ;;  %v1417_v25 = vsel %vm455_vm7, 1.0, %v3383_v16  ;;  %vm458_vm4 = vcmp.ge.f32.partialorder %v368_v18, %v2106_v28  ;;  %vm3499_vm7 = vmmov %vm3494_vm1 }
 0x1a8   :  { %v1418_v30 = vsel %vm456_vm14, 1.0, %v3383_v16  ;;  %v491_v47 = vadd.f32 %v487_v63, %v2724_v35  ;;  %v607_v62 = vadd.f32 %v487_v63, %v2327_v39  ;;  %v2969_v0 = vpop.permute.xlu1 %1684  ;;  %v2973_v27 = vmul.f32 0.20710544, %v367_v49 }
 0x1a9   :  { %v492_v34 = vadd.f32 %v488_v41, %v2727_v29  ;;  %v608_v31 = vadd.f32 %v488_v41, %v2330_v23  ;;  %v2975_v59 = vmul.f32 0.20710544, %v368_v18  ;;  %v2984_v63 = vsel %vm457_vm8, 1.0, %v3383_v16 }
 0x1aa   :  { %vm495_vm12 = vcmp.ge.f32.partialorder %v491_v47, %v2070_v10  ;;  %v611_v35 = vadd.f32 %v607_v62, %v3449_v2  ;;  %v2987_v41 = vsel %vm458_vm4, 1.0, %v3383_v16  ;;  %v2999_v6 = vadd.f32 %v2973_v27, %v3481_v56 }
 0x1ab   :  { %vm496_vm13 = vcmp.ge.f32.partialorder %v492_v34, %v2073_v11  ;;  %v612_v29 = vadd.f32 %v608_v31, %v3450_v53  ;;  %v1421_v40 = vsel %vm495_vm12, 1.0, %v3383_v16  ;;  %v3490_v53 = vld [vmem:[#allocation33_spill] sm:$0xff]  ;;  %v3491_v31 = vld [vmem:[#allocation34_spill] sm:$0xff] }
 0x1ac   :  { %v1422_v19 = vsel %vm496_vm13, 1.0, %v3383_v16  ;;  %v2990_v49 = vadd.f32 %v2861_v21, %v611_v35  ;;  %v635_v47 = vsub.f32 %v1417_v25, %v1421_v40  ;;  %v1695_v34 = vpop.permute.xlu1 %1694  ;;  %v647_v62 = vsub.f32 %v1421_v40, %v3490_v53 }
 0x1ad   :  { %v2993_v18 = vadd.f32 %v2863_v32, %v612_v29  ;;  %v636_v2 = vsub.f32 %v1418_v30, %v1422_v19  ;;  %v648_v37 = vsub.f32 %v1422_v19, %v3491_v31  ;;  %v719_v51 = vadd.f32 %v1421_v40, %v1417_v25 }
 0x1ae   :  { %3488 = vst [vmem:[#allocation32_spill] sm:$0xff] %v2990_v49  ;;  %v720_v20 = vadd.f32 %v1422_v19, %v1418_v30  ;;  %v639_v38 = vand.u32 2147483647, %v635_v47  ;;  %v3003_v21 = vadd.f32 %v2975_v59, %v3479_v55  ;;  %v651_v32 = vand.u32 2147483647, %v647_v62 }
 0x1af   :  { %3489 = vst [vmem:[#allocation31_spill] sm:$0xff] %v2993_v18  ;;  %v640_v12 = vand.u32 2147483647, %v636_v2  ;;  %v652_v35 = vand.u32 2147483647, %v648_v37  ;;  %v3006_v29 = vadd.f32 %v3490_v53, %v719_v51  ;;  %v1672_v25 = vunpack.i.h.bf16 %v2924_v9  ;;  %v3492_v51 = vld [vmem:[#allocation53_spill] sm:$0xff] }
 0x1b0   :  { %v3009_v45 = vadd.f32 %v3491_v31, %v720_v20  ;;  %v1671_v30 = vunpack.i.l.bf16 %v2924_v9  ;;  %v1677_v40 = vunpack.i.h.bf16 %v1675_v8  ;;  %v1676_v19 = vunpack.i.l.bf16 %v1675_v8  ;;  %v1705_v47 = vpop.permute.xlu1 %1704 }
 0x1b1   :  { %v3013_v2 = vadd.f32 %v651_v32, %v639_v38  ;;  %v3015_v14 = vadd.f32 %v652_v35, %v640_v12  ;;  %v1687_v62 = vunpack.i.h.bf16 %v2969_v0  ;;  %v1686_v37 = vunpack.i.l.bf16 %v2969_v0  ;;  %v3504_v12 = vld [vmem:[#allocation36_spill] sm:$0xff] }
 0x1b2   :  { %v3493_v13 = vunpack.i.l.bf16 %v3492_v51  ;;  %v3495_v18 = vunpack.i.h.bf16 %v3492_v51  ;;  %v242_v9 = vsel %vm3497_vm6, %v1666_v58, %v1676_v19  ;;  %v3498_v8 = vunpack.i.h.bf16 %v2895_v17 }
 0x1b3   :  { %v250_v35 = vsel %vm2441_vm11, %v242_v9, 0.0  ;;  %v1697_v58 = vunpack.i.h.bf16 %v1695_v34  ;;  %v1696_v51 = vunpack.i.l.bf16 %v1695_v34 }
 0x1b4   :  { %v240_v20 = vsel %vm3494_vm1, %v3493_v13, %v1671_v30  ;;  %v241_v49 = vsel %vm3496_vm2, %v3495_v18, %v1672_v25  ;;  %v243_v38 = vsel %vm3499_vm7, %v3498_v8, %v1677_v40  ;;  %v521_v25 = vmul.f32 0.50000453, %v250_v35  ;;  %v1715_v19 = vpop.permute.xlu1 %1714  ;;  %v3505_v35 = vld [vmem:[#allocation57_spill] sm:$0xff] }
 0x1b5   :  { %v248_v32 = vsel %vm2441_vm11, %v240_v20, 0.0  ;;  %v249_v0 = vsel %vm2212_vm15, %v241_v49, 0.0  ;;  %v251_v13 = vsel %vm2212_vm15, %v243_v38, 0.0  ;;  %v1707_v40 = vunpack.i.h.bf16 %v1705_v47  ;;  %v3503_v49 = vld [vmem:[#allocation35_spill] sm:$0xff]  ;;  %vm3508_vm11 = vmmov %vm3494_vm1 }
 0x1b6   :  { %v519_v30 = vmul.f32 0.50000453, %v248_v32  ;;  %v520_v18 = vmul.f32 0.50000453, %v249_v0  ;;  %v522_v17 = vmul.f32 0.50000453, %v251_v13  ;;  %v1706_v8 = vunpack.i.l.bf16 %v1705_v47 }
 0x1b7   :  { %v525_v42 = vadd.f32 %v521_v25, %v3503_v49  ;;  %v288_v9 = vsel %vm284_vm5, %v1687_v62, %v1697_v58  ;;  %v287_v38 = vsel %vm284_vm5, %v1686_v37, %v1696_v51  ;;  %v1717_v0 = vunpack.i.h.bf16 %v1715_v19  ;;  %v3506_v13 = vld [vmem:[#allocation56_spill] sm:$0xff] }
 0x1b8   :  { %v523_v20 = vadd.f32 %v519_v30, %v3501_v33  ;;  %v524_v61 = vadd.f32 %v520_v18, %v3502_v44  ;;  %v526_v52 = vadd.f32 %v522_v17, %v3504_v12  ;;  %v296_v32 = vsel %vm73_vm9, %v288_v9, 0.0 }
 0x1b9   :  { %v533_v33 = vadd.f32 %v2909_v7, %v525_v42  ;;  %v295_v44 = vsel %vm2391_vm0, %v287_v38, 0.0  ;;  %v474_v25 = vmul.f32 0.50000453, %v296_v32  ;;  %v1716_v58 = vunpack.i.l.bf16 %v1715_v19  ;;  %vm3509_vm0 = vmmov %vm3494_vm1 }
 0x1ba   :  { %v531_v34 = vadd.f32 %v3505_v35, %v523_v20  ;;  %v532_v47 = vadd.f32 %v3506_v13, %v524_v61  ;;  %v534_v18 = vadd.f32 %v2905_v57, %v526_v52  ;;  %v473_v62 = vmul.f32 0.50000453, %v295_v44 }
 0x1bb   :  { %v537_v51 = vadd.f32 %v533_v33, %v3481_v56  ;;  %v398_v20 = vsel %vm3508_vm11, %v1707_v40, %v1717_v0  ;;  %v478_v7 = vadd.f32 %v474_v25, %v3504_v12  ;;  %v397_v9 = vsel %vm3509_vm0, %v1706_v8, %v1716_v58  ;;  %v3510_v0 = vld [vmem:[#allocation38_spill] sm:$0xff] }
 0x1bc   :  { %v535_v37 = vadd.f32 %v531_v34, %v2327_v39  ;;  %v536_v17 = vadd.f32 %v532_v47, %v2330_v23  ;;  %v538_v61 = vadd.f32 %v534_v18, %v3479_v55  ;;  %v477_v42 = vadd.f32 %v473_v62, %v3503_v49  ;;  %v1725_v23 = vpop.permute.xlu1 %1724 }
 0x1bd   :  { %vm541_vm4 = vcmp.ge.f32.partialorder %v537_v51, %v3477_v46  ;;  %v405_v39 = vsel %vm2212_vm15, %v397_v9, 0.0  ;;  %v486_v51 = vadd.f32 %v3479_v55, %v478_v7  ;;  %v3512_v55 = vld [vmem:[#allocation40_spill] sm:$0xff] }
 0x1be   :  { %vm539_vm14 = vcmp.ge.f32.partialorder %v535_v37, %v2070_v10  ;;  %vm540_vm8 = vcmp.ge.f32.partialorder %v536_v17, %v2073_v11  ;;  %vm542_vm12 = vcmp.ge.f32.partialorder %v538_v61, %v2106_v28  ;;  %v1431_v19 = vsel %vm541_vm4, 1.0, %v3383_v16 }
 0x1bf   :  { %v1429_v52 = vsel %vm539_vm14, 1.0, %v3383_v16  ;;  %v1430_v57 = vsel %vm540_vm8, 1.0, %v3383_v16  ;;  %v1432_v32 = vsel %vm542_vm12, 1.0, %v3383_v16  ;;  %v661_v35 = vsub.f32 %v3510_v0, %v1431_v19 }
 0x1c0   :  { %v659_v40 = vsub.f32 %v3490_v53, %v1429_v52  ;;  %v660_v8 = vsub.f32 %v3491_v31, %v1430_v57  ;;  %v671_v49 = vsub.f32 %v1429_v52, %v2648_v4  ;;  %v672_v12 = vsub.f32 %v1430_v57, %v2644_v15  ;;  %v3511_v53 = vld [vmem:[#allocation39_spill] sm:$0xff]  ;;  %v1735_v58 = vpop.permute.xlu1 %1734 }
 0x1c1   :  { %v3073_v60 = vadd.f32 %v1429_v52, %v3006_v29  ;;  %v3076_v38 = vadd.f32 %v1430_v57, %v3009_v45  ;;  %v662_v31 = vsub.f32 %v3511_v53, %v1432_v32  ;;  %v3085_v30 = vand.u32 2147483647, %v661_v35 }
 0x1c2   :  { %v663_v34 = vand.u32 2147483647, %v659_v40  ;;  %v664_v13 = vand.u32 2147483647, %v660_v8  ;;  %v3080_v47 = vand.u32 2147483647, %v671_v49  ;;  %v673_v29 = vsub.f32 %v1431_v19, %v2918_v26 }
 0x1c3   :  { %v3083_v33 = vand.u32 2147483647, %v672_v12  ;;  %v674_v44 = vsub.f32 %v1432_v32, %v2913_v22  ;;  %v3095_v62 = vand.u32 2147483647, %v662_v31  ;;  %v485_v25 = vadd.f32 %v3481_v56, %v477_v42 }
 0x1c4   :  { %v3090_v45 = vadd.f32 %v663_v34, %v3013_v2  ;;  %v3093_v18 = vadd.f32 %v664_v13, %v3015_v14  ;;  %v3098_v37 = vand.u32 2147483647, %v673_v29  ;;  %v406_v61 = vsel %vm2545_vm3, %v398_v20, 0.0  ;;  %v3513_v29 = vld [vmem:[#allocation41_spill] sm:$0xff] }
 0x1c5   :  { %v3100_v17 = vand.u32 2147483647, %v674_v44  ;;  %v493_v2 = vadd.f32 %v2973_v27, %v485_v25  ;;  %v569_v9 = vmul.f32 0.50000453, %v405_v39  ;;  %v570_v52 = vmul.f32 0.50000453, %v406_v61 }
 0x1c6   :  { %v1727_v14 = vunpack.i.h.bf16 %v1725_v23  ;;  %v494_v57 = vadd.f32 %v2975_v59, %v486_v51  ;;  %v1726_v40 = vunpack.i.l.bf16 %v1725_v23  ;;  %v1737_v8 = vunpack.i.h.bf16 %v1735_v58 }
 0x1c7   :  { %v1736_v56 = vunpack.i.l.bf16 %v1735_v58  ;;  %vm497_vm15 = vcmp.ge.f32.partialorder %v493_v2, %v3477_v46  ;;  %v573_v42 = vadd.f32 %v569_v9, %v2932_v36  ;;  %v574_v49 = vadd.f32 %v570_v52, %v2922_v50 }
 0x1c8   :  { %v613_v1 = vadd.f32 %v2999_v6, %v3512_v55  ;;  %vm498_vm3 = vcmp.ge.f32.partialorder %v494_v57, %v2106_v28  ;;  %v1423_v27 = vsel %vm497_vm15, 1.0, %v3383_v16  ;;  %v442_v59 = vsel %vm284_vm5, %v1727_v14, %v1737_v8 }
 0x1c9   :  { %v441_v20 = vsel %vm284_vm5, %v1726_v40, %v1736_v56  ;;  %v1424_v7 = vsel %vm498_vm3, 1.0, %v3383_v16  ;;  %v637_v39 = vsub.f32 %v2984_v63, %v1423_v27  ;;  %v649_v23 = vsub.f32 %v1423_v27, %v3510_v0  ;;  %v1745_v40 = vpop.permute.xlu1 %1744 }
 0x1ca   :  { %v721_v36 = vadd.f32 %v1423_v27, %v2984_v63  ;;  %v638_v50 = vsub.f32 %v2987_v41, %v1424_v7  ;;  %v650_v6 = vsub.f32 %v1424_v7, %v3511_v53  ;;  %v722_v12 = vadd.f32 %v1424_v7, %v2987_v41  ;;  %v3514_v27 = vld [vmem:[#allocation58_spill] sm:$0xff] }
 0x1cb   :  { %v581_v35 = vadd.f32 %v3512_v55, %v573_v42  ;;  %v641_v34 = vand.u32 2147483647, %v637_v39  ;;  %v653_v13 = vand.u32 2147483647, %v649_v23  ;;  %v582_v44 = vadd.f32 %v3513_v29, %v574_v49  ;;  %v3515_v39 = vld [vmem:[#allocation59_spill] sm:$0xff] }
 0x1cc   :  { %v725_v31 = vadd.f32 %v3510_v0, %v721_v36  ;;  %v642_v25 = vand.u32 2147483647, %v638_v50  ;;  %v654_v58 = vand.u32 2147483647, %v650_v6  ;;  %v726_v51 = vadd.f32 %v3511_v53, %v722_v12  ;;  %v3516_v50 = vld [vmem:[#allocation42_spill] sm:$0xff]  ;;  %v3517_v12 = vld [vmem:[#allocation44_spill] sm:$0xff] }
 0x1cd   :  { %vm585_vm13 = vcmp.ge.f32.partialorder %v581_v35, %v3477_v46  ;;  %v657_v63 = vadd.f32 %v653_v13, %v641_v34  ;;  %vm586_vm1 = vcmp.ge.f32.partialorder %v582_v44, %v2106_v28  ;;  %v449_v57 = vsel %vm73_vm9, %v441_v20, 0.0  ;;  %v3518_v34 = vld [vmem:[#allocation43_spill] sm:$0xff] }
 0x1ce   :  { %v3130_v61 = vsel %vm585_vm13, 1.0, %v3383_v16  ;;  %v729_v41 = vadd.f32 %v1431_v19, %v725_v31  ;;  %v3132_v2 = vadd.f32 %v654_v58, %v642_v25  ;;  %v3135_v9 = vsel %vm586_vm1, 1.0, %v3383_v16 }
 0x1cf   :  { %v685_v0 = vsub.f32 %v2918_v26, %v3130_v61  ;;  %v730_v52 = vadd.f32 %v1432_v32, %v726_v51  ;;  %v686_v53 = vsub.f32 %v2913_v22, %v3135_v9  ;;  %v450_v19 = vsel %vm2831_vm10, %v442_v59, 0.0 }
 0x1d0   :  { %v733_v14 = vadd.f32 %v2918_v26, %v729_v41  ;;  %v614_v42 = vadd.f32 %v3003_v21, %v3513_v29  ;;  %v617_v32 = vmul.f32 0.50000453, %v449_v57  ;;  %v618_v26 = vmul.f32 0.50000453, %v450_v19  ;;  %v3521_v29 = vld [vmem:[#allocation64_spill] sm:$0xff] }
 0x1d1   :  { %v3146_v8 = vand.u32 2147483647, %v685_v0  ;;  %v734_v56 = vadd.f32 %v2913_v22, %v730_v52  ;;  %v3151_v49 = vand.u32 2147483647, %v686_v53  ;;  %v1213_v20 = vadd.f32 %v3514_v27, %v3451_v43  ;;  %v3525_v27 = vld [vmem:[#allocation21_spill] sm:$0xff] }
 0x1d2   :  { %v737_v55 = vadd.f32 %v3130_v61, %v733_v14  ;;  %v621_v59 = vadd.f32 %v617_v32, %v613_v1  ;;  %v1214_v23 = vadd.f32 %v3515_v39, %v3453_v48  ;;  %v1747_v36 = vunpack.i.h.bf16 %v1745_v40  ;;  %v3520_v1 = vld [vmem:[#allocation45_spill] sm:$0xff]  ;;  %v3527_v39 = vld [vmem:[#allocation32_spill] sm:$0xff] }
 0x1d3   :  { %v738_v7 = vadd.f32 %v3135_v9, %v734_v56  ;;  %v622_v22 = vadd.f32 %v618_v26, %v614_v42  ;;  %v1746_v21 = vunpack.i.l.bf16 %v1745_v40  ;;  %v1297_v35 = vsub.f32 %v2825_v5, %v3517_v12  ;;  %v3523_v40 = vld [vmem:[#allocation20_spill] sm:$0xff]  ;;  %v3524_v56 = vld [vmem:[#allocation51_spill] sm:$0xff] }
 0x1d4   :  { %v741_v6 = vadd.f32 %v3516_v50, %v737_v55  ;;  %vm625_vm2 = vcmp.ge.f32.partialorder %v621_v59, %v3477_v46  ;;  %v3519_v43 = vunpack.i.h.bf16 %v2747_v54  ;;  %v1298_v44 = vsub.f32 %v3521_v29, %v3520_v1 }
 0x1d5   :  { %v742_v13 = vadd.f32 %v3518_v34, %v738_v7  ;;  %vm626_vm6 = vcmp.ge.f32.partialorder %v622_v22, %v2106_v28  ;;  %v1447_v48 = vsel %vm625_vm2, 1.0, %v3383_v16  ;;  %v3522_v25 = vunpack.i.l.bf16 %v2747_v54 }
 0x1d6   :  { %v1046_v31 = vsel %vm284_vm5, %v3519_v43, %v1747_v36  ;;  %v1448_v51 = vsel %vm626_vm6, 1.0, %v3383_v16  ;;  %v709_v41 = vsub.f32 %v3516_v50, %v1447_v48  ;;  %v3178_v0 = vadd.f32 %v1447_v48, %v741_v6  ;;  %v3528_v36 = vld [vmem:[#allocation31_spill] sm:$0xff]  ;;  %v3529_v6 = vld [vmem:[#allocation16_spill] sm:$0xff] }
 0x1d7   :  { %v1045_v58 = vsel %vm284_vm5, %v3522_v25, %v1746_v21  ;;  %v1050_v46 = vsel %vm2831_vm10, %v1046_v31, 0.0  ;;  %v710_v28 = vsub.f32 %v3518_v34, %v1448_v51  ;;  %v3183_v53 = vadd.f32 %v1448_v51, %v742_v13  ;;  %v3530_v21 = vld [vmem:[#allocation17_spill] sm:$0xff] }
 0x1d8   :  { %v1049_v52 = vsel %vm73_vm9, %v1045_v58, 0.0  ;;  %v1218_v54 = vmul.f32 0.50000453, %v1050_v46  ;;  %v713_v57 = vand.u32 2147483647, %v709_v41  ;;  %v1333_v42 = vadd.f32 %v3524_v56, %v3523_v40  ;;  %v3531_v46 = vld [vmem:[#allocation28_spill] sm:$0xff] }
 0x1d9   :  { %v1217_v14 = vmul.f32 0.50000453, %v1049_v52  ;;  %v3185_v19 = vand.u32 2147483647, %v1297_v35  ;;  %v3187_v24 = vand.u32 2147483647, %v1298_v44  ;;  %v1334_v7 = vadd.f32 %v3526_v3, %v3525_v27 }
 0x1da   :  { %v714_v32 = vand.u32 2147483647, %v710_v28  ;;  %v1222_v26 = vadd.f32 %v1218_v54, %v1214_v23  ;;  %v1337_v59 = vadd.f32 %v2825_v5, %v1333_v42  ;;  %vm623_vm5 = vcmp.ge.f32.partialorder %v3527_v39, %v2070_v10  ;;  %v3534_v52 = vld [vmem:[#allocation27_spill] sm:$0xff]  ;;  %v3536_v40 = vld [vmem:[#allocation66_spill] sm:$0xff] }
 0x1db   :  { %v1221_v55 = vadd.f32 %v1217_v14, %v1213_v20  ;;  %vm624_vm9 = vcmp.ge.f32.partialorder %v3528_v36, %v2073_v11  ;;  %v669_v22 = vadd.f32 %v3085_v30, %v657_v63  ;;  %v1338_v20 = vadd.f32 %v3521_v29, %v1334_v7  ;;  %v3539_v27 = vld [vmem:[#allocation46_spill] sm:$0xff]  ;;  %v3540_v7 = vld [vmem:[#allocation49_spill] sm:$0xff] }
 0x1dc   :  { %vm1226_vm7 = vcmp.ge.f32.partialorder %v1222_v26, %v3530_v21  ;;  %v1445_v23 = vsel %vm623_vm5, 1.0, %v3383_v16  ;;  %v1341_v13 = vadd.f32 %v3517_v12, %v1337_v59  ;;  %v1446_v10 = vsel %vm624_vm9, 1.0, %v3383_v16  ;;  %v3538_v26 = vld [vmem:[#allocation48_spill] sm:$0xff]  ;;  %v3541_v59 = vld [vmem:[#allocation47_spill] sm:$0xff]  ;;  %v3542_v21 = vld [vmem:[#allocation25_spill] sm:$0xff] }
 0x1dd   :  { %vm1225_vm10 = vcmp.ge.f32.partialorder %v1221_v55, %v3529_v6  ;;  %v1492_v5 = vsel %vm1226_vm7, 1.0, %v3383_v16  ;;  %v1342_v63 = vadd.f32 %v3520_v1, %v1338_v20  ;;  %v670_v43 = vadd.f32 %v3095_v62, %v3132_v2  ;;  %v3532_v2 = vld [vmem:[#allocation65_spill] sm:$0xff] }
 0x1de   :  { %v1491_v35 = vsel %vm1225_vm10, 1.0, %v3383_v16  ;;  %v1310_v30 = vsub.f32 %v3520_v1, %v1492_v5  ;;  %v679_v29 = vadd.f32 %v3080_v47, %v3090_v45  ;;  %v680_v44 = vadd.f32 %v3083_v33, %v3093_v18  ;;  %v3533_v18 = vld [vmem:[#allocation26_spill] sm:$0xff] }
 0x1df   :  { %v1309_v11 = vsub.f32 %v3517_v12, %v1491_v35  ;;  %v3212_v31 = vadd.f32 %v1491_v35, %v1341_v13  ;;  %v681_v48 = vadd.f32 %v3098_v37, %v669_v22  ;;  %v3223_v58 = vadd.f32 %v1492_v5, %v1342_v63  ;;  %v3543_v35 = vld [vmem:[#allocation62_spill] sm:$0xff]  ;;  %v3544_v5 = vld [vmem:[#allocation60_spill] sm:$0xff]  ;;  %v3546_v13 = vld [vmem:[#allocation61_spill] sm:$0xff] }
 0x1e0   :  { %v3221_v12 = vand.u32 2147483647, %v1310_v30  ;;  %v682_v1 = vadd.f32 %v3100_v17, %v670_v43  ;;  %v691_v62 = vadd.f32 %v3531_v46, %v679_v29  ;;  %v692_v51 = vadd.f32 %v3532_v2, %v680_v44  ;;  %v3535_v17 = vld [vmem:[#allocation29_spill] sm:$0xff]  ;;  %v3547_v29 = vld [vmem:[#allocation54_spill] sm:$0xff] }
 0x1e1   :  { %v3219_v25 = vand.u32 2147483647, %v1309_v11  ;;  %v693_v41 = vadd.f32 %v3146_v8, %v681_v48  ;;  %v697_v47 = vsub.f32 %v3130_v61, %v3516_v50  ;;  %v698_v45 = vsub.f32 %v3135_v9, %v3518_v34  ;;  %v3537_v9 = vld [vmem:[#allocation24_spill] sm:$0xff]  ;;  %v3548_v48 = vld [vmem:[#allocation55_spill] sm:$0xff] }
 0x1e2   :  { %v694_v33 = vadd.f32 %v3151_v49, %v682_v1  ;;  %v707_v37 = vsub.f32 %v3533_v18, %v1445_v23  ;;  %v708_v28 = vsub.f32 %v3534_v52, %v1446_v10  ;;  %v703_v54 = vadd.f32 %v3535_v17, %v691_v62  ;;  %v3549_v62 = vld [vmem:[#allocation67_spill] sm:$0xff]  ;;  %v3557_v17 = vld [vmem:[#allocation14_spill] sm:$0xff] }
 0x1e3   :  { %v701_v14 = vand.u32 2147483647, %v697_v47  ;;  %v704_v56 = vadd.f32 %v3536_v40, %v692_v51  ;;  %v731_v8 = vadd.f32 %v2648_v4, %v3073_v60  ;;  %v702_v42 = vand.u32 2147483647, %v698_v45  ;;  %v3552_v45 = vld [vmem:[#allocation69_spill] sm:$0xff] }
 0x1e4   :  { %v711_v55 = vand.u32 2147483647, %v707_v37  ;;  %v712_v61 = vand.u32 2147483647, %v708_v28  ;;  %v732_v49 = vadd.f32 %v2644_v15, %v3076_v38  ;;  %v1279_v3 = vadd.f32 %v3539_v27, %v3538_v26  ;;  %v3545_v38 = vld [vmem:[#allocation63_spill] sm:$0xff]  ;;  %v3555_v37 = vld [vmem:[#allocation70_spill] sm:$0xff] }
 0x1e5   :  { %v705_v50 = vadd.f32 %v701_v14, %v693_v41  ;;  %v735_v34 = vadd.f32 %v3537_v9, %v731_v8  ;;  %v1280_v39 = vadd.f32 %v3541_v59, %v3540_v7  ;;  %v706_v36 = vadd.f32 %v702_v42, %v694_v33  ;;  %v3550_v41 = vld [vmem:[#allocation68_spill] sm:$0xff] }
 0x1e6   :  { %v715_v22 = vadd.f32 %v711_v55, %v703_v54  ;;  %v716_v6 = vadd.f32 %v712_v61, %v704_v56  ;;  %v736_v4 = vadd.f32 %v3542_v21, %v732_v49  ;;  %v1281_v15 = vadd.f32 %v3544_v5, %v3543_v35 }
 0x1e7   :  { %v717_v60 = vadd.f32 %v713_v57, %v705_v50  ;;  %v739_v20 = vadd.f32 %v3533_v18, %v735_v34  ;;  %v1282_v11 = vadd.f32 %v3546_v13, %v3545_v38  ;;  %v718_v30 = vadd.f32 %v714_v32, %v706_v36 }
 0x1e8   :  { %v740_v63 = vadd.f32 %v3534_v52, %v736_v4  ;;  %vm747_vm11 = vcmp.le.f32.partialorder %v715_v22, 2.0  ;;  %vm748_vm0 = vcmp.le.f32.partialorder %v716_v6, 2.0  ;;  %v1291_v44 = vadd.f32 %v3547_v29, %v1279_v3 }
 0x1e9   :  { %v743_v43 = vadd.f32 %v1445_v23, %v739_v20  ;;  %vm749_vm14 = vcmp.le.f32.partialorder %v717_v60, 2.0  ;;  %v1292_v1 = vadd.f32 %v3548_v48, %v1280_v39  ;;  %vm750_vm8 = vcmp.le.f32.partialorder %v718_v30, 2.0 }
 0x1ea   :  { %v744_v57 = vadd.f32 %v1446_v10, %v740_v63  ;;  %v753_v46 = vsel %vm749_vm14, %v3178_v0, 9.0  ;;  %v1293_v2 = vadd.f32 %v3549_v62, %v1281_v15  ;;  %v754_v32 = vsel %vm750_vm8, %v3183_v53, 9.0 }
 0x1eb   :  { %v751_v51 = vsel %vm747_vm11, %v743_v43, 9.0  ;;  %vm757_vm4 = vcmp.lt.f32.partialorder %v753_v46, 5.0  ;;  %v1294_v47 = vadd.f32 %v3550_v41, %v1282_v11  ;;  %vm758_vm15 = vcmp.lt.f32.partialorder %v754_v32, 5.0 }
 0x1ec   :  { %v752_v23 = vsel %vm748_vm0, %v744_v57, 9.0  ;;  %vm755_vm12 = vcmp.lt.f32.partialorder %v751_v51, 5.0  ;;  %v1451_v33 = vsel %vm757_vm4, 1.0, %v3383_v16  ;;  %v1452_v0 = vsel %vm758_vm15, 1.0, %v3383_v16 }
 0x1ed   :  { %vm756_vm3 = vcmp.lt.f32.partialorder %v752_v23, 5.0  ;;  %v1449_v10 = vsel %vm755_vm12, 1.0, %v3383_v16  ;;  %vm3551_vm13 = vcmask 130048   ;;  %v1303_v18 = vadd.f32 %v3552_v45, %v1291_v44 }
 0x1ee   :  { %769 = vst.msk [vmem:[#allocation7 + $0x10] sm:$0xff] %vm3551_vm13, %v1451_v33  ;;  %v1450_v53 = vsel %vm756_vm3, 1.0, %v3383_v16  ;;  %vm3553_vm1 = vmmov %vm3551_vm13  ;;  %v1304_v52 = vadd.f32 %v3555_v37, %v1292_v1  ;;  %v1305_v28 = vadd.f32 %v3185_v19, %v1293_v2  ;;  %v1306_v14 = vadd.f32 %v3187_v24, %v1294_v47 }
 0x1ef   :  { %767 = vst.msk [vmem:[#allocation7] sm:$0xff] %vm3553_vm1, %v1449_v10  ;;  %vm3554_vm2 = vmmov %vm3553_vm1  ;;  %v1315_v54 = vadd.f32 %v3557_v17, %v1303_v18 }
 0x1f0   :  { %770 = vst.msk [vmem:[#allocation7 + $0x18] sm:$0xff] %vm3554_vm2, %v1452_v0  ;;  %vm3556_vm6 = vmmov %vm3553_vm1 }
 0x1f1   :  { %768 = vst.msk [vmem:[#allocation7 + $0x8] sm:$0xff] %vm3556_vm6, %v1450_v53 }
 0x1f2   :  { %1815 = shalt.err (!%p1812_p0)
}
 0x1f3   :  { %1382 = dma.vmem_to_hbm [thread:$0]  %s1377_s27, 512, %s3302_s2, [#allocation4], %s1853_s15, %s1853_s15, %s1854_s16   ;;  %v3558_v19 = vld [vmem:[#allocation15_spill] sm:$0xff]  ;;  %v1317_v40 = vadd.f32 %v3219_v25, %v1305_v28  ;;  %v1318_v56 = vadd.f32 %v3221_v12, %v1306_v14  ;;  %vm1347_vm5 = vcmp.le.f32.partialorder %v1315_v54, 2.0  ;;  %v3559_v8 = vld [vmem:[#allocation18_spill] sm:$0xff]  ;;  %vm3561_vm4 = vmmov %vm3553_vm1 }
 0x1f4   :  { %v1316_v24 = vadd.f32 %v3558_v19, %v1304_v52  ;;  %s1862_s4 = smov [#allocation8]   ;;  %v1351_v42 = vsel %vm1347_vm5, %v3559_v8, 9.0  ;;  %v3560_v55 = vld [vmem:[#allocation19_spill] sm:$0xff]  ;;  %vm3562_vm12 = vmmov %vm3553_vm1 }
 0x1f5   :  { %s1388_s5 = sshll.u32 %s1862_s4, 4  ;;  %vm1349_vm10 = vcmp.le.f32.partialorder %v1317_v40, 2.0  ;;  %vm1350_vm7 = vcmp.le.f32.partialorder %v1318_v56, 2.0  ;;  %vm1355_vm11 = vcmp.lt.f32.partialorder %v1351_v42, 5.0  ;;  %vm3563_vm15 = vmmov %vm3553_vm1  ;;  %s1389_s5 = int_to_ptr.vmem [resolvable:$true] %s1388_s5 }
 0x1f6   :  { %vm1348_vm9 = vcmp.le.f32.partialorder %v1316_v24, 2.0  ;;  %v1353_v49 = vsel %vm1349_vm10, %v3212_v31, 9.0  ;;  %v1354_v50 = vsel %vm1350_vm7, %v3223_v58, 9.0  ;;  %v1493_v25 = vsel %vm1355_vm11, 1.0, %v3383_v16  ;;  %vm3564_vm3 = vmmov %vm3553_vm1  ;;  %s1824_s2 = scalar_lea.vmem %s1389_s5, 512  ;;  %p1829_p2 = scmp.lt.s32.totalorder %s1389_s5, %s1389_s5 }
 0x1f7   :  { %v1352_v61 = vsel %vm1348_vm9, %v3560_v55, 9.0  ;;  %vm1357_vm14 = vcmp.lt.f32.partialorder %v1353_v49, 5.0  ;;  %vm1358_vm8 = vcmp.lt.f32.partialorder %v1354_v50, 5.0  ;;  %1367 = vst.msk [vmem:[#allocation8] sm:$0xff] %vm3561_vm4, %v1493_v25  ;;  %p1825_p1 = scmp.ne.s32.totalorder %s1389_s5, %s1824_s2  ;;  %p1830_p3 = scmp.lt.s32.totalorder %s1824_s2, %s1824_s2 }
 0x1f8   :  { %vm1356_vm0 = vcmp.lt.f32.partialorder %v1352_v61, 5.0  ;;  %v1495_v9 = vsel %vm1357_vm14, 1.0, %v3383_v16  ;;  %v1496_v34 = vsel %vm1358_vm8, 1.0, %v3383_v16 }
 0x1f9   :  { %v1494_v12 = vsel %vm1356_vm0, 1.0, %v3383_v16  ;;  %1369 = vst.msk [vmem:[#allocation8 + $0x10] sm:$0xff] %vm3563_vm15, %v1495_v9  ;;  %p1831_p4 = por %p1830_p3, %p1829_p2 }
 0x1fa   :  { %1368 = vst.msk [vmem:[#allocation8 + $0x8] sm:$0xff] %vm3562_vm12, %v1494_v12 }
 0x1fb   :  { %1370 = vst.msk [vmem:[#allocation8 + $0x18] sm:$0xff] %vm3564_vm3, %v1496_v34  ;;  %p1832_p5 = pnand %p1831_p4, %p1825_p1 }
 0x1fd   :  { %1835 = shalt.err (!%p1832_p5)
}
 0x1fe   :  { %1394 = dma.vmem_to_hbm [thread:$0]  %s1389_s5, 512, %s3303_s3, [#allocation9], %s1853_s15, %s1853_s15, %s1854_s16  }
 0x1ff   :  { %1848 = dma.done.wait [#allocation4], 512  }
 0x200   :  { %1849 = vsyncadd [#allocation4], 4294966784 }
 0x201   :  { %1850 = dma.done.wait [#allocation9], 512  }
 0x202   :  { %1851 = vsyncadd [#allocation9], 4294966784 }
 0x203   :  { %1401 = vsyncpa [#allocation3], 1 }
 0x204   :  { %1402 = vsyncpa [#allocation6], 1 }
 0x205   :  { %1403 = vsyncpa [#allocation4], 1 }
 0x206   :  { %1404 = vsyncpa [#allocation9], 1 }

</bundles_post_ra>
